<compile_context>
chip_gen: v6e
topology: v6e:2x2x1
jax: 0.10.0
libtpu: 0.0.40
codegen_flags: <defaults>
</compile_context>

<pallas_src>
import functools
import math

import jax
import jax.numpy as jnp
import numpy as np
from jax.experimental import pallas as pl
from jax.experimental.pallas import tpu as pltpu

BN_EPS = 1e-10       # matches torch.nn.BatchNorm1d(latent_dim, eps=1e-10)
LANE = 128           # pad all feature dims to multiples of the lane width
TB_MAX_FUSED = 512   # largest padded batch handled by the single fused call
TB_TILE = 256        # batch tile cap for the large-batch two-call path


def _round_up(n, m):
    return (n + m - 1) // m * m


# ---------------------------------------------------------------------------
# Shared in-kernel helpers
# ---------------------------------------------------------------------------
def _lin(h, w_ref, b_ref):
    # bf16 MXU operands, f32 accumulate, f32 bias add.
    return jnp.dot(h, w_ref[...], preferred_element_type=jnp.float32) + b_ref[...]


def _relu_bf16(v):
    # relu in f32 (v5e-safe), single cast to bf16 for the next MXU operand.
    return jnp.maximum(v, 0.0).astype(jnp.bfloat16)


# ---------------------------------------------------------------------------
# Single fused kernel (whole padded batch in one VMEM-resident tile).
# ---------------------------------------------------------------------------
def fused_vae_kernel(x_ref, eps_ref,
                     w1, b1, w2, b2, w3, b3, w4, b4, wms, bms, gamma, beta,
                     w6, b6, w7, b7, w8, b8, w9, b9, w10, b10,
                     recon_ref, z_ref, *, n_valid, latent_pad):
    x = x_ref[...]                                    # bf16, dropout pre-applied
    h1 = _relu_bf16(_lin(x, w1, b1))
    h2 = _relu_bf16(_lin(h1, w2, b2))
    h3 = _relu_bf16(_lin(h2, w3, b3))
    h4 = _relu_bf16(_lin(h3, w4, b4))
    ms = _lin(h4, wms, bms)                           # f32 [TB, 2*latent_pad]

    mu_pre = ms[:, :latent_pad]
    sig_pre = ms[:, latent_pad:]

    # Full-batch BatchNorm1d (training mode) statistics over the real rows only
    # (padded batch rows are masked out of the reduction).
    rows = jax.lax.broadcasted_iota(jnp.int32, mu_pre.shape, 0)
    valid = (rows < n_valid).astype(jnp.float32)
    inv_n = 1.0 / float(n_valid)
    mv = mu_pre * valid
    mean = jnp.sum(mv, axis=0, keepdims=True) * inv_n
    ex2 = jnp.sum(mv * mu_pre, axis=0, keepdims=True) * inv_n
    var = jnp.maximum(ex2 - mean * mean, 0.0)
    scale = gamma[...] * jax.lax.rsqrt(var + BN_EPS)
    shift = beta[...] - mean * scale

    mu = mu_pre * scale + shift                       # folded BN (train)
    std = jax.lax.rsqrt(1.0 + jnp.exp(-sig_pre))      # sqrt(sigmoid(sig_pre))
    z = mu + eps_ref[...] * std                       # reparameterize

    zb = z.astype(jnp.bfloat16)
    h6 = _relu_bf16(_lin(zb, w6, b6))
    h7 = _relu_bf16(_lin(h6, w7, b7))
    h8 = _relu_bf16(_lin(h7, w8, b8))
    h9 = _relu_bf16(_lin(h8, w9, b9))
    recon_ref[...] = jnp.maximum(_lin(h9, w10, b10), 0.0)
    z_ref[...] = z


# ---------------------------------------------------------------------------
# Large-batch path, kernel 1: fc1..4 -> fused [mu|sigma] + per-tile BN partials
# ---------------------------------------------------------------------------
def encoder_kernel(x_ref, w1, b1, w2, b2, w3, b3, w4, b4, wms, bms,
                   ms_ref, stat_ref, *, n_valid, latent_pad):
    tb = x_ref.shape[0]
    x = x_ref[...]                                    # bf16, dropout pre-applied
    h1 = _relu_bf16(_lin(x, w1, b1))
    h2 = _relu_bf16(_lin(h1, w2, b2))
    h3 = _relu_bf16(_lin(h2, w3, b3))
    h4 = _relu_bf16(_lin(h3, w4, b4))
    ms = _lin(h4, wms, bms)                           # f32 [TB, 2*latent_pad]
    ms_ref[...] = ms

    # Per-tile BN partial sums over valid (unpadded) rows: row 0 = sum(mu_pre),
    # row 1 = sum(mu_pre^2), rows 2..7 zero (lane-dense (8,128) output slab).
    mu_pre = ms[:, :latent_pad]
    rows = jax.lax.broadcasted_iota(jnp.int32, mu_pre.shape, 0) + pl.program_id(0) * tb
    valid = (rows < n_valid).astype(jnp.float32)
    mv = mu_pre * valid
    s1 = jnp.sum(mv, axis=0, keepdims=True)
    s2 = jnp.sum(mv * mu_pre, axis=0, keepdims=True)
    r8 = jax.lax.broadcasted_iota(jnp.int32, (8, latent_pad), 0)
    slab = (jnp.where(r8 == 0, jnp.broadcast_to(s1, (8, latent_pad)), 0.0)
            + jnp.where(r8 == 1, jnp.broadcast_to(s2, (8, latent_pad)), 0.0))
    stat_ref[...] = slab


# ---------------------------------------------------------------------------
# Large-batch path, kernel 2: BN (pre-folded scale/shift) -> reparam -> fc6..10
# ---------------------------------------------------------------------------
def decoder_kernel(ms_ref, eps_ref, scale_ref, shift_ref,
                   w6, b6, w7, b7, w8, b8, w9, b9, w10, b10,
                   recon_ref, z_ref, *, latent_pad):
    msv = ms_ref[...]
    mu_pre = msv[:, :latent_pad]
    sig_pre = msv[:, latent_pad:]

    mu = mu_pre * scale_ref[...] + shift_ref[...]     # folded BatchNorm1d (train)
    std = jax.lax.rsqrt(1.0 + jnp.exp(-sig_pre))      # sqrt(sigmoid(sig_pre))
    z = mu + eps_ref[...] * std

    zb = z.astype(jnp.bfloat16)
    h6 = _relu_bf16(_lin(zb, w6, b6))
    h7 = _relu_bf16(_lin(h6, w7, b7))
    h8 = _relu_bf16(_lin(h7, w8, b8))
    h9 = _relu_bf16(_lin(h8, w9, b9))
    recon_ref[...] = jnp.maximum(_lin(h9, w10, b10), 0.0)
    z_ref[...] = z


# ---------------------------------------------------------------------------
# Wrapper: dropout prologue, padding, path selection, pallas_call plumbing.
# ---------------------------------------------------------------------------
def _vae_forward_impl(x, eps, drop_key, packed, *, p_drop, tb_max=TB_MAX_FUSED):
    (w1, b1, w2, b2, w3, b3, w4, b4, wms, bms, gamma, beta,
     w6, b6, w7, b7, w8, b8, w9, b9, w10, b10) = packed

    B, input_dim = x.shape
    latent_dim = eps.shape[1]
    input_pad = w1.shape[0]
    latent_pad = w6.shape[0]

    # Training-mode inverted dropout applied in the XLA prologue (one fused op).
    # TODO(synk): the on-chip hardware PRNG (pltpu.prng_*) has no interpret/CPU
    # lowering, so dropout randomness comes from jax.random here instead.
    if p_drop > 0.0:
        keep = jax.random.bernoulli(drop_key, 1.0 - p_drop, x.shape)
        x = jnp.where(keep, x * (1.0 / (1.0 - p_drop)), 0.0)

    Bp_min = _round_up(B, 8)

    # ======================= small batch: one fused call =======================
    if Bp_min <= tb_max:
        TB = Bp_min
        xp = (jnp.zeros((TB, input_pad), jnp.float32)
              .at[:B, :input_dim].set(x).astype(jnp.bfloat16))
        epsp = jnp.zeros((TB, latent_pad), jnp.float32).at[:B, :latent_dim].set(eps)

        inputs = [xp, epsp, w1, b1, w2, b2, w3, b3, w4, b4, wms, bms,
                  gamma, beta, w6, b6, w7, b7, w8, b8, w9, b9, w10, b10]
        in_specs = [pl.BlockSpec(a.shape, lambda i: (0, 0)) for a in inputs]

        recon_p, z_p = pl.pallas_call(
            functools.partial(fused_vae_kernel, n_valid=B, latent_pad=latent_pad),
            grid=(1,),
            in_specs=in_specs,
            out_specs=(pl.BlockSpec((TB, input_pad), lambda i: (0, 0)),
                       pl.BlockSpec((TB, latent_pad), lambda i: (0, 0))),
            out_shape=(jax.ShapeDtypeStruct((TB, input_pad), jnp.float32),
                       jax.ShapeDtypeStruct((TB, latent_pad), jnp.float32)),
            compiler_params=pltpu.CompilerParams(
                dimension_semantics=("arbitrary",)),
        )(*inputs)
        return recon_p[:B, :input_dim], z_p[:B, :latent_dim]

    # ================ large batch: batch-tiled two-call pipeline ================
    # Adaptive tile: at least 2 "parallel" tiles (v7x has 2 TensorCores), <=256 rows.
    TB = max(8, min(TB_TILE, tb_max, _round_up((B + 1) // 2, 8)))
    TB = _round_up(TB, 8)
    Bp = _round_up(B, TB)
    ntiles = Bp // TB

    xp = (jnp.zeros((Bp, input_pad), jnp.float32)
          .at[:B, :input_dim].set(x).astype(jnp.bfloat16))
    epsp = jnp.zeros((Bp, latent_pad), jnp.float32).at[:B, :latent_dim].set(eps)

    def tile_map(i):
        return (i, 0)

    def const_map(i):
        return (0, 0)

    # ---------- pass 1: encoder + fused mu/sigma + per-tile BN partials ----------
    enc_inputs = [xp, w1, b1, w2, b2, w3, b3, w4, b4, wms, bms]
    enc_in_specs = ([pl.BlockSpec((TB, input_pad), tile_map)]
                    + [pl.BlockSpec(a.shape, const_map) for a in enc_inputs[1:]])

    ms, stats = pl.pallas_call(
        functools.partial(encoder_kernel, n_valid=B, latent_pad=latent_pad),
        grid=(ntiles,),
        in_specs=enc_in_specs,
        out_specs=(pl.BlockSpec((TB, 2 * latent_pad), tile_map),
                   pl.BlockSpec((8, latent_pad), tile_map)),
        out_shape=(jax.ShapeDtypeStruct((Bp, 2 * latent_pad), jnp.float32),
                   jax.ShapeDtypeStruct((8 * ntiles, latent_pad), jnp.float32)),
        compiler_params=pltpu.CompilerParams(
            dimension_semantics=("parallel",)),
    )(*enc_inputs)

    # Tiny (ntiles, latent_pad) reduction of the per-tile partial sums; fold
    # gamma/beta into scale/shift so the decoder's BN epilogue is one mul + add.
    stats_r = stats.reshape(ntiles, 8, latent_pad)
    s1 = jnp.sum(stats_r[:, 0, :], axis=0, keepdims=True)
    s2 = jnp.sum(stats_r[:, 1, :], axis=0, keepdims=True)
    inv_n = 1.0 / B
    mean = s1 * inv_n
    var = jnp.maximum(s2 * inv_n - mean * mean, 0.0)
    scale = gamma * jax.lax.rsqrt(var + BN_EPS)
    shift = beta - mean * scale
    # TODO(synk): BatchNorm running_mean/var buffers (momentum=0.01) are not
    # updated -- training-mode forward only.

    # ---------- pass 2: BN + reparameterize + decoder ----------
    dec_inputs = [ms, epsp, scale, shift,
                  w6, b6, w7, b7, w8, b8, w9, b9, w10, b10]
    dec_in_specs = ([pl.BlockSpec((TB, 2 * latent_pad), tile_map),
                     pl.BlockSpec((TB, latent_pad), tile_map)]
                    + [pl.BlockSpec(a.shape, const_map) for a in dec_inputs[2:]])

    recon_p, z_p = pl.pallas_call(
        functools.partial(decoder_kernel, latent_pad=latent_pad),
        grid=(ntiles,),
        in_specs=dec_in_specs,
        out_specs=(pl.BlockSpec((TB, input_pad), tile_map),
                   pl.BlockSpec((TB, latent_pad), tile_map)),
        out_shape=(jax.ShapeDtypeStruct((Bp, input_pad), jnp.float32),
                   jax.ShapeDtypeStruct((Bp, latent_pad), jnp.float32)),
        compiler_params=pltpu.CompilerParams(
            dimension_semantics=("parallel",)),
    )(*dec_inputs)

    return recon_p[:B, :input_dim], z_p[:B, :latent_dim]


vae_forward = jax.jit(_vae_forward_impl, static_argnames=("p_drop", "tb_max"))


# ---------------------------------------------------------------------------
# Pure-JAX reference mirroring the kernel math (same padded bf16 weights).
# ---------------------------------------------------------------------------
def vae_reference(x_dropped, eps, packed, input_dim, latent_dim):
    (w1, b1, w2, b2, w3, b3, w4, b4, wms, bms, gamma, beta,
     w6, b6, w7, b7, w8, b8, w9, b9, w10, b10) = packed
    input_pad = w1.shape[0]
    latent_pad = w6.shape[0]
    B = x_dropped.shape[0]

    def lin(h, w, b):
        return jnp.dot(h, w, preferred_element_type=jnp.float32) + b

    def relu_bf16(v):
        return jnp.maximum(v, 0.0).astype(jnp.bfloat16)

    xp = (jnp.zeros((B, input_pad), jnp.float32)
          .at[:, :input_dim].set(x_dropped).astype(jnp.bfloat16))
    epsp = jnp.zeros((B, latent_pad), jnp.float32).at[:, :latent_dim].set(eps)

    h1 = relu_bf16(lin(xp, w1, b1))
    h2 = relu_bf16(lin(h1, w2, b2))
    h3 = relu_bf16(lin(h2, w3, b3))
    h4 = relu_bf16(lin(h3, w4, b4))
    ms = lin(h4, wms, bms)
    mu_pre = ms[:, :latent_pad]
    sig_pre = ms[:, latent_pad:]
    mean = jnp.mean(mu_pre, axis=0, keepdims=True)
    var = jnp.maximum(jnp.mean(mu_pre * mu_pre, axis=0, keepdims=True) - mean * mean, 0.0)
    scale = gamma * jax.lax.rsqrt(var + BN_EPS)
    shift = beta - mean * scale
    mu = mu_pre * scale + shift
    std = jax.lax.rsqrt(1.0 + jnp.exp(-sig_pre))
    z = mu + epsp * std
    zb = z.astype(jnp.bfloat16)
    h6 = relu_bf16(lin(zb, w6, b6))
    h7 = relu_bf16(lin(h6, w7, b7))
    h8 = relu_bf16(lin(h7, w8, b8))
    h9 = relu_bf16(lin(h8, w9, b9))
    recon = jnp.maximum(lin(h9, w10, b10), 0.0)
    return recon[:, :input_dim], z[:, :latent_dim]


# ---------------------------------------------------------------------------
# Deterministic parameter construction (PyTorch nn.Linear default init style).
# Raw weights stored pre-transposed [in, out]; biases as [1, out].
# ---------------------------------------------------------------------------
def make_linear(key, in_dim, out_dim):
    kw, kb = jax.random.split(key)
    bound = 1.0 / math.sqrt(in_dim)
    w_t = jax.random.uniform(kw, (in_dim, out_dim), jnp.float32, -bound, bound)
    b = jax.random.uniform(kb, (1, out_dim), jnp.float32, -bound, bound)
    return w_t, b


def make_params(key, input_dim, fc_dim, latent_dim):
    keys = jax.random.split(key, 11)
    p = {}
    p["w1"], p["b1"] = make_linear(keys[0], input_dim, fc_dim)
    p["w2"], p["b2"] = make_linear(keys[1], fc_dim, fc_dim)
    p["w3"], p["b3"] = make_linear(keys[2], fc_dim, fc_dim)
    p["w4"], p["b4"] = make_linear(keys[3], fc_dim, fc_dim)
    p["wmu"], p["bmu"] = make_linear(keys[4], fc_dim, latent_dim)
    p["wsig"], p["bsig"] = make_linear(keys[5], fc_dim, latent_dim)
    p["gamma"] = jnp.ones((1, latent_dim), jnp.float32)
    p["beta"] = jnp.zeros((1, latent_dim), jnp.float32)
    p["w6"], p["b6"] = make_linear(keys[6], latent_dim, fc_dim)
    p["w7"], p["b7"] = make_linear(keys[7], fc_dim, fc_dim)
    p["w8"], p["b8"] = make_linear(keys[8], fc_dim, fc_dim)
    p["w9"], p["b9"] = make_linear(keys[9], fc_dim, fc_dim)
    p["w10"], p["b10"] = make_linear(keys[10], fc_dim, input_dim)
    return p


def pack_params(raw, input_dim, fc_dim, latent_dim):
    """Zero-pad all feature dims to 128-lane multiples, fuse mu||sigma into one
    weight, cast matmul weights to bf16 (biases / BN affine stay f32)."""
    input_pad = _round_up(input_dim, LANE)
    fc_pad = _round_up(fc_dim, LANE)
    latent_pad = _round_up(latent_dim, LANE)

    def pad_w(w, in_pad, out_pad):
        out = jnp.zeros((in_pad, out_pad), jnp.float32)
        out = out.at[:w.shape[0], :w.shape[1]].set(w)
        return out.astype(jnp.bfloat16)

    def pad_b(b, out_pad):
        return jnp.zeros((1, out_pad), jnp.float32).at[:, :b.shape[1]].set(b)

    w1 = pad_w(raw["w1"], input_pad, fc_pad); b1 = pad_b(raw["b1"], fc_pad)
    w2 = pad_w(raw["w2"], fc_pad, fc_pad);    b2 = pad_b(raw["b2"], fc_pad)
    w3 = pad_w(raw["w3"], fc_pad, fc_pad);    b3 = pad_b(raw["b3"], fc_pad)
    w4 = pad_w(raw["w4"], fc_pad, fc_pad);    b4 = pad_b(raw["b4"], fc_pad)

    # Fused [fc_mu | fc_sigma] -> one (fc_pad, 2*latent_pad) matmul.
    wms = jnp.zeros((fc_pad, 2 * latent_pad), jnp.float32)
    wms = wms.at[:fc_dim, :latent_dim].set(raw["wmu"])
    wms = wms.at[:fc_dim, latent_pad:latent_pad + latent_dim].set(raw["wsig"])
    wms = wms.astype(jnp.bfloat16)
    bms = jnp.zeros((1, 2 * latent_pad), jnp.float32)
    bms = bms.at[:, :latent_dim].set(raw["bmu"])
    bms = bms.at[:, latent_pad:latent_pad + latent_dim].set(raw["bsig"])

    gamma = jnp.zeros((1, latent_pad), jnp.float32).at[:, :latent_dim].set(raw["gamma"])
    beta = jnp.zeros((1, latent_pad), jnp.float32).at[:, :latent_dim].set(raw["beta"])

    w6 = pad_w(raw["w6"], latent_pad, fc_pad);  b6 = pad_b(raw["b6"], fc_pad)
    w7 = pad_w(raw["w7"], fc_pad, fc_pad);      b7 = pad_b(raw["b7"], fc_pad)
    w8 = pad_w(raw["w8"], fc_pad, fc_pad);      b8 = pad_b(raw["b8"], fc_pad)
    w9 = pad_w(raw["w9"], fc_pad, fc_pad);      b9 = pad_b(raw["b9"], fc_pad)
    w10 = pad_w(raw["w10"], fc_pad, input_pad); b10 = pad_b(raw["b10"], input_pad)

    return (w1, b1, w2, b2, w3, b3, w4, b4, wms, bms, gamma, beta,
            w6, b6, w7, b7, w8, b8, w9, b9, w10, b10)


if __name__ == "__main__":
    input_dim, fc_dim, latent_dim = 64, 32, 16
    p_drop = 0.1

    root = jax.random.PRNGKey(0)
    (k_param, k_x1, k_eps1, k_drop1,
     k_x2, k_eps2, k_drop2) = jax.random.split(root, 7)

    raw = make_params(k_param, input_dim, fc_dim, latent_dim)
    packed = pack_params(raw, input_dim, fc_dim, latent_dim)

    def reference(x, eps, k_drop):
        keep = jax.random.bernoulli(k_drop, 1.0 - p_drop, x.shape)
        x_dropped = jnp.where(keep, x * (1.0 / (1.0 - p_drop)), 0.0)
        return vae_reference(x_dropped, eps, packed, input_dim, latent_dim)

    # ---- path 1: small batch -> single fused pallas_call ----
    B1 = 32
    x1 = jax.random.normal(k_x1, (B1, input_dim), jnp.float32)
    eps1 = jax.random.normal(k_eps1, (B1, latent_dim), jnp.float32)
    recon1, z1 = jax.block_until_ready(
        vae_forward(x1, eps1, k_drop1, packed, p_drop=p_drop))
    assert recon1.shape == (B1, input_dim) and z1.shape == (B1, latent_dim)
    assert bool(jnp.all(jnp.isfinite(recon1))) and bool(jnp.all(jnp.isfinite(z1)))
    r_ref1, z_ref1 = reference(x1, eps1, k_drop1)
    np.testing.assert_allclose(np.asarray(recon1), np.asarray(r_ref1), rtol=3e-2, atol=3e-2)
    np.testing.assert_allclose(np.asarray(z1), np.asarray(z_ref1), rtol=3e-2, atol=3e-2)

    # ---- path 2: force the batch-tiled two-call path (3 tiles of 16 rows) ----
    B2 = 40
    x2 = jax.random.normal(k_x2, (B2, input_dim), jnp.float32)
    eps2 = jax.random.normal(k_eps2, (B2, latent_dim), jnp.float32)
    recon2, z2 = jax.block_until_ready(
        vae_forward(x2, eps2, k_drop2, packed, p_drop=p_drop, tb_max=16))
    assert recon2.shape == (B2, input_dim) and z2.shape == (B2, latent_dim)
    assert bool(jnp.all(jnp.isfinite(recon2))) and bool(jnp.all(jnp.isfinite(z2)))
    r_ref2, z_ref2 = reference(x2, eps2, k_drop2)
    np.testing.assert_allclose(np.asarray(recon2), np.asarray(r_ref2), rtol=3e-2, atol=3e-2)
    np.testing.assert_allclose(np.asarray(z2), np.asarray(z_ref2), rtol=3e-2, atol=3e-2)

    print("KERNEL_OK")
</pallas_src>

<mosaic_0001>
module attributes {stable_mosaic.version = 11 : i64} {
  func.func @fused_vae_kernel(%arg0: i32, %arg1: memref<32x128xbf16, #tpu.memory_space<vmem>>, %arg2: memref<32x128xf32, #tpu.memory_space<vmem>>, %arg3: memref<128x128xbf16, #tpu.memory_space<vmem>>, %arg4: memref<1x128xf32, #tpu.memory_space<vmem>>, %arg5: memref<128x128xbf16, #tpu.memory_space<vmem>>, %arg6: memref<1x128xf32, #tpu.memory_space<vmem>>, %arg7: memref<128x128xbf16, #tpu.memory_space<vmem>>, %arg8: memref<1x128xf32, #tpu.memory_space<vmem>>, %arg9: memref<128x128xbf16, #tpu.memory_space<vmem>>, %arg10: memref<1x128xf32, #tpu.memory_space<vmem>>, %arg11: memref<128x256xbf16, #tpu.memory_space<vmem>>, %arg12: memref<1x256xf32, #tpu.memory_space<vmem>>, %arg13: memref<1x128xf32, #tpu.memory_space<vmem>>, %arg14: memref<1x128xf32, #tpu.memory_space<vmem>>, %arg15: memref<128x128xbf16, #tpu.memory_space<vmem>>, %arg16: memref<1x128xf32, #tpu.memory_space<vmem>>, %arg17: memref<128x128xbf16, #tpu.memory_space<vmem>>, %arg18: memref<1x128xf32, #tpu.memory_space<vmem>>, %arg19: memref<128x128xbf16, #tpu.memory_space<vmem>>, %arg20: memref<1x128xf32, #tpu.memory_space<vmem>>, %arg21: memref<128x128xbf16, #tpu.memory_space<vmem>>, %arg22: memref<1x128xf32, #tpu.memory_space<vmem>>, %arg23: memref<128x128xbf16, #tpu.memory_space<vmem>>, %arg24: memref<1x128xf32, #tpu.memory_space<vmem>>, %arg25: memref<32x128xf32, #tpu.memory_space<vmem>>, %arg26: memref<32x128xf32, #tpu.memory_space<vmem>>) attributes {dimension_semantics = [#tpu.dimension_semantics<arbitrary>], iteration_bounds = array<i64: 1>, scalar_prefetch = 0 : i64, scratch_operands = 0 : i64, tpu.core_type = #tpu.core_type<tc>, window_params = [{pipeline_mode = #tpu.pipeline_mode<synchronous>, transform_indices = @transform_0, window_bounds = array<i64: 32, 128>}, {pipeline_mode = #tpu.pipeline_mode<synchronous>, transform_indices = @transform_1, window_bounds = array<i64: 32, 128>}, {pipeline_mode = #tpu.pipeline_mode<synchronous>, transform_indices = @transform_2, window_bounds = array<i64: 128, 128>}, {pipeline_mode = #tpu.pipeline_mode<synchronous>, transform_indices = @transform_3, window_bounds = array<i64: 1, 128>}, {pipeline_mode = #tpu.pipeline_mode<synchronous>, transform_indices = @transform_4, window_bounds = array<i64: 128, 128>}, {pipeline_mode = #tpu.pipeline_mode<synchronous>, transform_indices = @transform_5, window_bounds = array<i64: 1, 128>}, {pipeline_mode = #tpu.pipeline_mode<synchronous>, transform_indices = @transform_6, window_bounds = array<i64: 128, 128>}, {pipeline_mode = #tpu.pipeline_mode<synchronous>, transform_indices = @transform_7, window_bounds = array<i64: 1, 128>}, {pipeline_mode = #tpu.pipeline_mode<synchronous>, transform_indices = @transform_8, window_bounds = array<i64: 128, 128>}, {pipeline_mode = #tpu.pipeline_mode<synchronous>, transform_indices = @transform_9, window_bounds = array<i64: 1, 128>}, {pipeline_mode = #tpu.pipeline_mode<synchronous>, transform_indices = @transform_10, window_bounds = array<i64: 128, 256>}, {pipeline_mode = #tpu.pipeline_mode<synchronous>, transform_indices = @transform_11, window_bounds = array<i64: 1, 256>}, {pipeline_mode = #tpu.pipeline_mode<synchronous>, transform_indices = @transform_12, window_bounds = array<i64: 1, 128>}, {pipeline_mode = #tpu.pipeline_mode<synchronous>, transform_indices = @transform_13, window_bounds = array<i64: 1, 128>}, {pipeline_mode = #tpu.pipeline_mode<synchronous>, transform_indices = @transform_14, window_bounds = array<i64: 128, 128>}, {pipeline_mode = #tpu.pipeline_mode<synchronous>, transform_indices = @transform_15, window_bounds = array<i64: 1, 128>}, {pipeline_mode = #tpu.pipeline_mode<synchronous>, transform_indices = @transform_16, window_bounds = array<i64: 128, 128>}, {pipeline_mode = #tpu.pipeline_mode<synchronous>, transform_indices = @transform_17, window_bounds = array<i64: 1, 128>}, {pipeline_mode = #tpu.pipeline_mode<synchronous>, transform_indices = @transform_18, window_bounds = array<i64: 128, 128>}, {pipeline_mode = #tpu.pipeline_mode<synchronous>, transform_indices = @transform_19, window_bounds = array<i64: 1, 128>}, {pipeline_mode = #tpu.pipeline_mode<synchronous>, transform_indices = @transform_20, window_bounds = array<i64: 128, 128>}, {pipeline_mode = #tpu.pipeline_mode<synchronous>, transform_indices = @transform_21, window_bounds = array<i64: 1, 128>}, {pipeline_mode = #tpu.pipeline_mode<synchronous>, transform_indices = @transform_22, window_bounds = array<i64: 128, 128>}, {pipeline_mode = #tpu.pipeline_mode<synchronous>, transform_indices = @transform_23, window_bounds = array<i64: 1, 128>}, {pipeline_mode = #tpu.pipeline_mode<synchronous>, transform_indices = @transform_24, window_bounds = array<i64: 32, 128>}, {pipeline_mode = #tpu.pipeline_mode<synchronous>, transform_indices = @transform_25, window_bounds = array<i64: 32, 128>}]} {
    %c0 = arith.constant 0 : index
    %c0_0 = arith.constant 0 : index
    %0 = vector.load %arg1[%c0, %c0_0] : memref<32x128xbf16, #tpu.memory_space<vmem>>, vector<32x128xbf16>
    %c0_1 = arith.constant 0 : index
    %c0_2 = arith.constant 0 : index
    %1 = vector.load %arg3[%c0_1, %c0_2] : memref<128x128xbf16, #tpu.memory_space<vmem>>, vector<128x128xbf16>
    %cst = arith.constant dense<0.000000e+00> : vector<32x128xf32>
    %2 = tpu.matmul %0, %1, %cst {dimension_numbers = #tpu.dot_dimension_numbers<[1], [0], [0], [1], [0, 0, 1, 1], [], []>} : vector<32x128xbf16>, vector<128x128xbf16>, vector<32x128xf32> -> vector<32x128xf32>
    %c0_3 = arith.constant 0 : index
    %c0_4 = arith.constant 0 : index
    %3 = vector.load %arg4[%c0_3, %c0_4] : memref<1x128xf32, #tpu.memory_space<vmem>>, vector<1x128xf32>
    %4 = vector.broadcast %3 : vector<1x128xf32> to vector<32x128xf32>
    %5 = arith.addf %2, %4 : vector<32x128xf32>
    %cst_5 = arith.constant 0.000000e+00 : f32
    %6 = vector.broadcast %cst_5 : f32 to vector<32x128xf32>
    %7 = arith.maximumf %5, %6 : vector<32x128xf32>
    %8 = arith.truncf %7 : vector<32x128xf32> to vector<32x128xbf16>
    %c0_6 = arith.constant 0 : index
    %c0_7 = arith.constant 0 : index
    %9 = vector.load %arg5[%c0_6, %c0_7] : memref<128x128xbf16, #tpu.memory_space<vmem>>, vector<128x128xbf16>
    %cst_8 = arith.constant dense<0.000000e+00> : vector<32x128xf32>
    %10 = tpu.matmul %8, %9, %cst_8 {dimension_numbers = #tpu.dot_dimension_numbers<[1], [0], [0], [1], [0, 0, 1, 1], [], []>} : vector<32x128xbf16>, vector<128x128xbf16>, vector<32x128xf32> -> vector<32x128xf32>
    %c0_9 = arith.constant 0 : index
    %c0_10 = arith.constant 0 : index
    %11 = vector.load %arg6[%c0_9, %c0_10] : memref<1x128xf32, #tpu.memory_space<vmem>>, vector<1x128xf32>
    %12 = vector.broadcast %11 : vector<1x128xf32> to vector<32x128xf32>
    %13 = arith.addf %10, %12 : vector<32x128xf32>
    %cst_11 = arith.constant 0.000000e+00 : f32
    %14 = vector.broadcast %cst_11 : f32 to vector<32x128xf32>
    %15 = arith.maximumf %13, %14 : vector<32x128xf32>
    %16 = arith.truncf %15 : vector<32x128xf32> to vector<32x128xbf16>
    %c0_12 = arith.constant 0 : index
    %c0_13 = arith.constant 0 : index
    %17 = vector.load %arg7[%c0_12, %c0_13] : memref<128x128xbf16, #tpu.memory_space<vmem>>, vector<128x128xbf16>
    %cst_14 = arith.constant dense<0.000000e+00> : vector<32x128xf32>
    %18 = tpu.matmul %16, %17, %cst_14 {dimension_numbers = #tpu.dot_dimension_numbers<[1], [0], [0], [1], [0, 0, 1, 1], [], []>} : vector<32x128xbf16>, vector<128x128xbf16>, vector<32x128xf32> -> vector<32x128xf32>
    %c0_15 = arith.constant 0 : index
    %c0_16 = arith.constant 0 : index
    %19 = vector.load %arg8[%c0_15, %c0_16] : memref<1x128xf32, #tpu.memory_space<vmem>>, vector<1x128xf32>
    %20 = vector.broadcast %19 : vector<1x128xf32> to vector<32x128xf32>
    %21 = arith.addf %18, %20 : vector<32x128xf32>
    %cst_17 = arith.constant 0.000000e+00 : f32
    %22 = vector.broadcast %cst_17 : f32 to vector<32x128xf32>
    %23 = arith.maximumf %21, %22 : vector<32x128xf32>
    %24 = arith.truncf %23 : vector<32x128xf32> to vector<32x128xbf16>
    %c0_18 = arith.constant 0 : index
    %c0_19 = arith.constant 0 : index
    %25 = vector.load %arg9[%c0_18, %c0_19] : memref<128x128xbf16, #tpu.memory_space<vmem>>, vector<128x128xbf16>
    %cst_20 = arith.constant dense<0.000000e+00> : vector<32x128xf32>
    %26 = tpu.matmul %24, %25, %cst_20 {dimension_numbers = #tpu.dot_dimension_numbers<[1], [0], [0], [1], [0, 0, 1, 1], [], []>} : vector<32x128xbf16>, vector<128x128xbf16>, vector<32x128xf32> -> vector<32x128xf32>
    %c0_21 = arith.constant 0 : index
    %c0_22 = arith.constant 0 : index
    %27 = vector.load %arg10[%c0_21, %c0_22] : memref<1x128xf32, #tpu.memory_space<vmem>>, vector<1x128xf32>
    %28 = vector.broadcast %27 : vector<1x128xf32> to vector<32x128xf32>
    %29 = arith.addf %26, %28 : vector<32x128xf32>
    %cst_23 = arith.constant 0.000000e+00 : f32
    %30 = vector.broadcast %cst_23 : f32 to vector<32x128xf32>
    %31 = arith.maximumf %29, %30 : vector<32x128xf32>
    %32 = arith.truncf %31 : vector<32x128xf32> to vector<32x128xbf16>
    %c0_24 = arith.constant 0 : index
    %c0_25 = arith.constant 0 : index
    %33 = vector.load %arg11[%c0_24, %c0_25] : memref<128x256xbf16, #tpu.memory_space<vmem>>, vector<128x256xbf16>
    %cst_26 = arith.constant dense<0.000000e+00> : vector<32x256xf32>
    %34 = tpu.matmul %32, %33, %cst_26 {dimension_numbers = #tpu.dot_dimension_numbers<[1], [0], [0], [1], [0, 0, 1, 1], [], []>} : vector<32x128xbf16>, vector<128x256xbf16>, vector<32x256xf32> -> vector<32x256xf32>
    %c0_27 = arith.constant 0 : index
    %c0_28 = arith.constant 0 : index
    %35 = vector.load %arg12[%c0_27, %c0_28] : memref<1x256xf32, #tpu.memory_space<vmem>>, vector<1x256xf32>
    %36 = vector.broadcast %35 : vector<1x256xf32> to vector<32x256xf32>
    %37 = arith.addf %34, %36 : vector<32x256xf32>
    %38 = vector.extract_strided_slice %37 {offsets = [0, 0], sizes = [32, 128], strides = [1, 1]} : vector<32x256xf32> to vector<32x128xf32>
    %39 = vector.extract_strided_slice %37 {offsets = [0, 128], sizes = [32, 128], strides = [1, 1]} : vector<32x256xf32> to vector<32x128xf32>
    %40 = tpu.iota {dimensions = array<i32: 0>} : vector<32x128xi32>
    %c32_i32 = arith.constant 32 : i32
    %41 = vector.broadcast %c32_i32 : i32 to vector<32x128xi32>
    %42 = arith.cmpi slt, %40, %41 : vector<32x128xi32>
    %43 = arith.extui %42 : vector<32x128xi1> to vector<32x128xi32>
    %44 = arith.sitofp %43 : vector<32x128xi32> to vector<32x128xf32>
    %45 = arith.mulf %38, %44 : vector<32x128xf32>
    %cst_29 = arith.constant dense<0.000000e+00> : vector<128xf32>
    %46 = vector.multi_reduction <add>, %45, %cst_29 [0] : vector<32x128xf32> to vector<128xf32>
    %47 = vector.shape_cast %46 : vector<128xf32> to vector<1x128xf32>
    %cst_30 = arith.constant 3.125000e-02 : f32
    %48 = vector.broadcast %cst_30 : f32 to vector<1x128xf32>
    %49 = arith.mulf %47, %48 : vector<1x128xf32>
    %50 = arith.mulf %45, %38 : vector<32x128xf32>
    %cst_31 = arith.constant dense<0.000000e+00> : vector<128xf32>
    %51 = vector.multi_reduction <add>, %50, %cst_31 [0] : vector<32x128xf32> to vector<128xf32>
    %52 = vector.shape_cast %51 : vector<128xf32> to vector<1x128xf32>
    %cst_32 = arith.constant 3.125000e-02 : f32
    %53 = vector.broadcast %cst_32 : f32 to vector<1x128xf32>
    %54 = arith.mulf %52, %53 : vector<1x128xf32>
    %55 = arith.mulf %49, %49 : vector<1x128xf32>
    %56 = arith.subf %54, %55 : vector<1x128xf32>
    %cst_33 = arith.constant 0.000000e+00 : f32
    %57 = vector.broadcast %cst_33 : f32 to vector<1x128xf32>
    %58 = arith.maximumf %56, %57 : vector<1x128xf32>
    %c0_34 = arith.constant 0 : index
    %c0_35 = arith.constant 0 : index
    %59 = vector.load %arg13[%c0_34, %c0_35] : memref<1x128xf32, #tpu.memory_space<vmem>>, vector<1x128xf32>
    %cst_36 = arith.constant 1.000000e-10 : f32
    %60 = vector.broadcast %cst_36 : f32 to vector<1x128xf32>
    %61 = arith.addf %58, %60 : vector<1x128xf32>
    %62 = math.rsqrt %61 : vector<1x128xf32>
    %63 = arith.mulf %59, %62 : vector<1x128xf32>
    %c0_37 = arith.constant 0 : index
    %c0_38 = arith.constant 0 : index
    %64 = vector.load %arg14[%c0_37, %c0_38] : memref<1x128xf32, #tpu.memory_space<vmem>>, vector<1x128xf32>
    %65 = arith.mulf %49, %63 : vector<1x128xf32>
    %66 = arith.subf %64, %65 : vector<1x128xf32>
    %67 = vector.broadcast %63 : vector<1x128xf32> to vector<32x128xf32>
    %68 = arith.mulf %38, %67 : vector<32x128xf32>
    %69 = vector.broadcast %66 : vector<1x128xf32> to vector<32x128xf32>
    %70 = arith.addf %68, %69 : vector<32x128xf32>
    %cst_39 = arith.constant 0.000000e+00 : f32
    %71 = vector.broadcast %cst_39 : f32 to vector<32x128xf32>
    %72 = arith.subf %71, %39 : vector<32x128xf32>
    %73 = math.exp %72 : vector<32x128xf32>
    %cst_40 = arith.constant 1.000000e+00 : f32
    %74 = vector.broadcast %cst_40 : f32 to vector<32x128xf32>
    %75 = arith.addf %74, %73 : vector<32x128xf32>
    %76 = math.rsqrt %75 : vector<32x128xf32>
    %c0_41 = arith.constant 0 : index
    %c0_42 = arith.constant 0 : index
    %77 = vector.load %arg2[%c0_41, %c0_42] : memref<32x128xf32, #tpu.memory_space<vmem>>, vector<32x128xf32>
    %78 = arith.mulf %77, %76 : vector<32x128xf32>
    %79 = arith.addf %70, %78 : vector<32x128xf32>
    %80 = arith.truncf %79 : vector<32x128xf32> to vector<32x128xbf16>
    %c0_43 = arith.constant 0 : index
    %c0_44 = arith.constant 0 : index
    %81 = vector.load %arg15[%c0_43, %c0_44] : memref<128x128xbf16, #tpu.memory_space<vmem>>, vector<128x128xbf16>
    %cst_45 = arith.constant dense<0.000000e+00> : vector<32x128xf32>
    %82 = tpu.matmul %80, %81, %cst_45 {dimension_numbers = #tpu.dot_dimension_numbers<[1], [0], [0], [1], [0, 0, 1, 1], [], []>} : vector<32x128xbf16>, vector<128x128xbf16>, vector<32x128xf32> -> vector<32x128xf32>
    %c0_46 = arith.constant 0 : index
    %c0_47 = arith.constant 0 : index
    %83 = vector.load %arg16[%c0_46, %c0_47] : memref<1x128xf32, #tpu.memory_space<vmem>>, vector<1x128xf32>
    %84 = vector.broadcast %83 : vector<1x128xf32> to vector<32x128xf32>
    %85 = arith.addf %82, %84 : vector<32x128xf32>
    %cst_48 = arith.constant 0.000000e+00 : f32
    %86 = vector.broadcast %cst_48 : f32 to vector<32x128xf32>
    %87 = arith.maximumf %85, %86 : vector<32x128xf32>
    %88 = arith.truncf %87 : vector<32x128xf32> to vector<32x128xbf16>
    %c0_49 = arith.constant 0 : index
    %c0_50 = arith.constant 0 : index
    %89 = vector.load %arg17[%c0_49, %c0_50] : memref<128x128xbf16, #tpu.memory_space<vmem>>, vector<128x128xbf16>
    %cst_51 = arith.constant dense<0.000000e+00> : vector<32x128xf32>
    %90 = tpu.matmul %88, %89, %cst_51 {dimension_numbers = #tpu.dot_dimension_numbers<[1], [0], [0], [1], [0, 0, 1, 1], [], []>} : vector<32x128xbf16>, vector<128x128xbf16>, vector<32x128xf32> -> vector<32x128xf32>
    %c0_52 = arith.constant 0 : index
    %c0_53 = arith.constant 0 : index
    %91 = vector.load %arg18[%c0_52, %c0_53] : memref<1x128xf32, #tpu.memory_space<vmem>>, vector<1x128xf32>
    %92 = vector.broadcast %91 : vector<1x128xf32> to vector<32x128xf32>
    %93 = arith.addf %90, %92 : vector<32x128xf32>
    %cst_54 = arith.constant 0.000000e+00 : f32
    %94 = vector.broadcast %cst_54 : f32 to vector<32x128xf32>
    %95 = arith.maximumf %93, %94 : vector<32x128xf32>
    %96 = arith.truncf %95 : vector<32x128xf32> to vector<32x128xbf16>
    %c0_55 = arith.constant 0 : index
    %c0_56 = arith.constant 0 : index
    %97 = vector.load %arg19[%c0_55, %c0_56] : memref<128x128xbf16, #tpu.memory_space<vmem>>, vector<128x128xbf16>
    %cst_57 = arith.constant dense<0.000000e+00> : vector<32x128xf32>
    %98 = tpu.matmul %96, %97, %cst_57 {dimension_numbers = #tpu.dot_dimension_numbers<[1], [0], [0], [1], [0, 0, 1, 1], [], []>} : vector<32x128xbf16>, vector<128x128xbf16>, vector<32x128xf32> -> vector<32x128xf32>
    %c0_58 = arith.constant 0 : index
    %c0_59 = arith.constant 0 : index
    %99 = vector.load %arg20[%c0_58, %c0_59] : memref<1x128xf32, #tpu.memory_space<vmem>>, vector<1x128xf32>
    %100 = vector.broadcast %99 : vector<1x128xf32> to vector<32x128xf32>
    %101 = arith.addf %98, %100 : vector<32x128xf32>
    %cst_60 = arith.constant 0.000000e+00 : f32
    %102 = vector.broadcast %cst_60 : f32 to vector<32x128xf32>
    %103 = arith.maximumf %101, %102 : vector<32x128xf32>
    %104 = arith.truncf %103 : vector<32x128xf32> to vector<32x128xbf16>
    %c0_61 = arith.constant 0 : index
    %c0_62 = arith.constant 0 : index
    %105 = vector.load %arg21[%c0_61, %c0_62] : memref<128x128xbf16, #tpu.memory_space<vmem>>, vector<128x128xbf16>
    %cst_63 = arith.constant dense<0.000000e+00> : vector<32x128xf32>
    %106 = tpu.matmul %104, %105, %cst_63 {dimension_numbers = #tpu.dot_dimension_numbers<[1], [0], [0], [1], [0, 0, 1, 1], [], []>} : vector<32x128xbf16>, vector<128x128xbf16>, vector<32x128xf32> -> vector<32x128xf32>
    %c0_64 = arith.constant 0 : index
    %c0_65 = arith.constant 0 : index
    %107 = vector.load %arg22[%c0_64, %c0_65] : memref<1x128xf32, #tpu.memory_space<vmem>>, vector<1x128xf32>
    %108 = vector.broadcast %107 : vector<1x128xf32> to vector<32x128xf32>
    %109 = arith.addf %106, %108 : vector<32x128xf32>
    %cst_66 = arith.constant 0.000000e+00 : f32
    %110 = vector.broadcast %cst_66 : f32 to vector<32x128xf32>
    %111 = arith.maximumf %109, %110 : vector<32x128xf32>
    %112 = arith.truncf %111 : vector<32x128xf32> to vector<32x128xbf16>
    %c0_67 = arith.constant 0 : index
    %c0_68 = arith.constant 0 : index
    %113 = vector.load %arg23[%c0_67, %c0_68] : memref<128x128xbf16, #tpu.memory_space<vmem>>, vector<128x128xbf16>
    %cst_69 = arith.constant dense<0.000000e+00> : vector<32x128xf32>
    %114 = tpu.matmul %112, %113, %cst_69 {dimension_numbers = #tpu.dot_dimension_numbers<[1], [0], [0], [1], [0, 0, 1, 1], [], []>} : vector<32x128xbf16>, vector<128x128xbf16>, vector<32x128xf32> -> vector<32x128xf32>
    %c0_70 = arith.constant 0 : index
    %c0_71 = arith.constant 0 : index
    %115 = vector.load %arg24[%c0_70, %c0_71] : memref<1x128xf32, #tpu.memory_space<vmem>>, vector<1x128xf32>
    %116 = vector.broadcast %115 : vector<1x128xf32> to vector<32x128xf32>
    %117 = arith.addf %114, %116 : vector<32x128xf32>
    %cst_72 = arith.constant 0.000000e+00 : f32
    %118 = vector.broadcast %cst_72 : f32 to vector<32x128xf32>
    %119 = arith.maximumf %117, %118 : vector<32x128xf32>
    %c0_73 = arith.constant 0 : index
    %c0_74 = arith.constant 0 : index
    %120 = vector.load %arg25[%c0_73, %c0_74] : memref<32x128xf32, #tpu.memory_space<vmem>>, vector<32x128xf32>
    tpu.vector_store %arg25[%c0_73, %c0_74], %119 {strides = array<i32>} : memref<32x128xf32, #tpu.memory_space<vmem>>, vector<32x128xf32>,
    %c0_75 = arith.constant 0 : index
    %c0_76 = arith.constant 0 : index
    %121 = vector.load %arg26[%c0_75, %c0_76] : memref<32x128xf32, #tpu.memory_space<vmem>>, vector<32x128xf32>
    tpu.vector_store %arg26[%c0_75, %c0_76], %79 {strides = array<i32>} : memref<32x128xf32, #tpu.memory_space<vmem>>, vector<32x128xf32>,
    return
  }
  func.func @transform_0(%arg0: i32) -> (i32, i32) {
    %c0_i32 = arith.constant 0 : i32
    %c0_i32_0 = arith.constant 0 : i32
    %c0_i32_1 = arith.constant 0 : i32
    return %c0_i32, %c0_i32_0 : i32, i32
  }
  func.func @transform_1(%arg0: i32) -> (i32, i32) {
    %c0_i32 = arith.constant 0 : i32
    %c0_i32_0 = arith.constant 0 : i32
    %c0_i32_1 = arith.constant 0 : i32
    return %c0_i32, %c0_i32_0 : i32, i32
  }
  func.func @transform_2(%arg0: i32) -> (i32, i32) {
    %c0_i32 = arith.constant 0 : i32
    %c0_i32_0 = arith.constant 0 : i32
    %c0_i32_1 = arith.constant 0 : i32
    return %c0_i32, %c0_i32_0 : i32, i32
  }
  func.func @transform_3(%arg0: i32) -> (i32, i32) {
    %c0_i32 = arith.constant 0 : i32
    %c0_i32_0 = arith.constant 0 : i32
    %c0_i32_1 = arith.constant 0 : i32
    return %c0_i32, %c0_i32_0 : i32, i32
  }
  func.func @transform_4(%arg0: i32) -> (i32, i32) {
    %c0_i32 = arith.constant 0 : i32
    %c0_i32_0 = arith.constant 0 : i32
    %c0_i32_1 = arith.constant 0 : i32
    return %c0_i32, %c0_i32_0 : i32, i32
  }
  func.func @transform_5(%arg0: i32) -> (i32, i32) {
    %c0_i32 = arith.constant 0 : i32
    %c0_i32_0 = arith.constant 0 : i32
    %c0_i32_1 = arith.constant 0 : i32
    return %c0_i32, %c0_i32_0 : i32, i32
  }
  func.func @transform_6(%arg0: i32) -> (i32, i32) {
    %c0_i32 = arith.constant 0 : i32
    %c0_i32_0 = arith.constant 0 : i32
    %c0_i32_1 = arith.constant 0 : i32
    return %c0_i32, %c0_i32_0 : i32, i32
  }
  func.func @transform_7(%arg0: i32) -> (i32, i32) {
    %c0_i32 = arith.constant 0 : i32
    %c0_i32_0 = arith.constant 0 : i32
    %c0_i32_1 = arith.constant 0 : i32
    return %c0_i32, %c0_i32_0 : i32, i32
  }
  func.func @transform_8(%arg0: i32) -> (i32, i32) {
    %c0_i32 = arith.constant 0 : i32
    %c0_i32_0 = arith.constant 0 : i32
    %c0_i32_1 = arith.constant 0 : i32
    return %c0_i32, %c0_i32_0 : i32, i32
  }
  func.func @transform_9(%arg0: i32) -> (i32, i32) {
    %c0_i32 = arith.constant 0 : i32
    %c0_i32_0 = arith.constant 0 : i32
    %c0_i32_1 = arith.constant 0 : i32
    return %c0_i32, %c0_i32_0 : i32, i32
  }
  func.func @transform_10(%arg0: i32) -> (i32, i32) {
    %c0_i32 = arith.constant 0 : i32
    %c0_i32_0 = arith.constant 0 : i32
    %c0_i32_1 = arith.constant 0 : i32
    return %c0_i32, %c0_i32_0 : i32, i32
  }
  func.func @transform_11(%arg0: i32) -> (i32, i32) {
    %c0_i32 = arith.constant 0 : i32
    %c0_i32_0 = arith.constant 0 : i32
    %c0_i32_1 = arith.constant 0 : i32
    return %c0_i32, %c0_i32_0 : i32, i32
  }
  func.func @transform_12(%arg0: i32) -> (i32, i32) {
    %c0_i32 = arith.constant 0 : i32
    %c0_i32_0 = arith.constant 0 : i32
    %c0_i32_1 = arith.constant 0 : i32
    return %c0_i32, %c0_i32_0 : i32, i32
  }
  func.func @transform_13(%arg0: i32) -> (i32, i32) {
    %c0_i32 = arith.constant 0 : i32
    %c0_i32_0 = arith.constant 0 : i32
    %c0_i32_1 = arith.constant 0 : i32
    return %c0_i32, %c0_i32_0 : i32, i32
  }
  func.func @transform_14(%arg0: i32) -> (i32, i32) {
    %c0_i32 = arith.constant 0 : i32
    %c0_i32_0 = arith.constant 0 : i32
    %c0_i32_1 = arith.constant 0 : i32
    return %c0_i32, %c0_i32_0 : i32, i32
  }
  func.func @transform_15(%arg0: i32) -> (i32, i32) {
    %c0_i32 = arith.constant 0 : i32
    %c0_i32_0 = arith.constant 0 : i32
    %c0_i32_1 = arith.constant 0 : i32
    return %c0_i32, %c0_i32_0 : i32, i32
  }
  func.func @transform_16(%arg0: i32) -> (i32, i32) {
    %c0_i32 = arith.constant 0 : i32
    %c0_i32_0 = arith.constant 0 : i32
    %c0_i32_1 = arith.constant 0 : i32
    return %c0_i32, %c0_i32_0 : i32, i32
  }
  func.func @transform_17(%arg0: i32) -> (i32, i32) {
    %c0_i32 = arith.constant 0 : i32
    %c0_i32_0 = arith.constant 0 : i32
    %c0_i32_1 = arith.constant 0 : i32
    return %c0_i32, %c0_i32_0 : i32, i32
  }
  func.func @transform_18(%arg0: i32) -> (i32, i32) {
    %c0_i32 = arith.constant 0 : i32
    %c0_i32_0 = arith.constant 0 : i32
    %c0_i32_1 = arith.constant 0 : i32
    return %c0_i32, %c0_i32_0 : i32, i32
  }
  func.func @transform_19(%arg0: i32) -> (i32, i32) {
    %c0_i32 = arith.constant 0 : i32
    %c0_i32_0 = arith.constant 0 : i32
    %c0_i32_1 = arith.constant 0 : i32
    return %c0_i32, %c0_i32_0 : i32, i32
  }
  func.func @transform_20(%arg0: i32) -> (i32, i32) {
    %c0_i32 = arith.constant 0 : i32
    %c0_i32_0 = arith.constant 0 : i32
    %c0_i32_1 = arith.constant 0 : i32
    return %c0_i32, %c0_i32_0 : i32, i32
  }
  func.func @transform_21(%arg0: i32) -> (i32, i32) {
    %c0_i32 = arith.constant 0 : i32
    %c0_i32_0 = arith.constant 0 : i32
    %c0_i32_1 = arith.constant 0 : i32
    return %c0_i32, %c0_i32_0 : i32, i32
  }
  func.func @transform_22(%arg0: i32) -> (i32, i32) {
    %c0_i32 = arith.constant 0 : i32
    %c0_i32_0 = arith.constant 0 : i32
    %c0_i32_1 = arith.constant 0 : i32
    return %c0_i32, %c0_i32_0 : i32, i32
  }
  func.func @transform_23(%arg0: i32) -> (i32, i32) {
    %c0_i32 = arith.constant 0 : i32
    %c0_i32_0 = arith.constant 0 : i32
    %c0_i32_1 = arith.constant 0 : i32
    return %c0_i32, %c0_i32_0 : i32, i32
  }
  func.func @transform_24(%arg0: i32) -> (i32, i32) {
    %c0_i32 = arith.constant 0 : i32
    %c0_i32_0 = arith.constant 0 : i32
    %c0_i32_1 = arith.constant 0 : i32
    return %c0_i32, %c0_i32_0 : i32, i32
  }
  func.func @transform_25(%arg0: i32) -> (i32, i32) {
    %c0_i32 = arith.constant 0 : i32
    %c0_i32_0 = arith.constant 0 : i32
    %c0_i32_1 = arith.constant 0 : i32
    return %c0_i32, %c0_i32_0 : i32, i32
  }
}

</mosaic_0001>

<bundles_post_ra>
// kernel: _vae_forward_impl.1
= control target key start
LH: loop header
LB: loop body
LE: loop exit
PB: predicated region body
PF: predicated region fallthrough
CT: control target
= control target key end

     0   :  { %s2899_s0 = inlined_call_operand.vmem [shape: bf16[32,128], index: 0, kind: input, shape index: {}]   ;;  %s2900_s1 = inlined_call_operand.vmem [shape: f32[32,128], index: 1, kind: input, shape index: {}]   ;;  %s2901_s2 = inlined_call_operand.vmem [shape: bf16[128,128], index: 2, kind: input, shape index: {}]   ;;  %s2902_s3 = inlined_call_operand.vmem [shape: f32[1,128], index: 3, kind: input, shape index: {}]   ;;  %s2903_s4 = inlined_call_operand.vmem [shape: bf16[128,128], index: 4, kind: input, shape index: {}]   ;;  %s2904_s5 = inlined_call_operand.hbm [shape: f32[1,128], index: 5, kind: input, shape index: {}]   ;;  %s2905_s6 = inlined_call_operand.hbm [shape: bf16[128,128], index: 6, kind: input, shape index: {}]   ;;  %s2906_s7 = inlined_call_operand.hbm [shape: f32[1,128], index: 7, kind: input, shape index: {}]   ;;  %s2907_s8 = inlined_call_operand.hbm [shape: bf16[128,128], index: 8, kind: input, shape index: {}]   ;;  %s2908_s9 = inlined_call_operand.hbm [shape: f32[1,128], index: 9, kind: input, shape index: {}]   ;;  %s2909_s10 = inlined_call_operand.vmem [shape: bf16[128,256], index: 10, kind: input, shape index: {}]   ;;  %s2910_s11 = inlined_call_operand.hbm [shape: f32[1,256], index: 11, kind: input, shape index: {}]   ;;  %s2911_s12 = inlined_call_operand.hbm [shape: f32[1,128], index: 12, kind: input, shape index: {}]   ;;  %s2912_s13 = inlined_call_operand.hbm [shape: f32[1,128], index: 13, kind: input, shape index: {}]   ;;  %s2913_s14 = inlined_call_operand.vmem [shape: bf16[128,128], index: 14, kind: input, shape index: {}]   ;;  %s2914_s15 = inlined_call_operand.hbm [shape: f32[1,128], index: 15, kind: input, shape index: {}]   ;;  %s2915_s16 = inlined_call_operand.hbm [shape: bf16[128,128], index: 16, kind: input, shape index: {}]   ;;  %s2916_s17 = inlined_call_operand.vmem [shape: f32[1,128], index: 17, kind: input, shape index: {}]   ;;  %s2917_s18 = inlined_call_operand.hbm [shape: bf16[128,128], index: 18, kind: input, shape index: {}]   ;;  %s2918_s19 = inlined_call_operand.vmem [shape: f32[1,128], index: 19, kind: input, shape index: {}]   ;;  %s2919_s20 = inlined_call_operand.hbm [shape: bf16[128,128], index: 20, kind: input, shape index: {}]   ;;  %s2920_s21 = inlined_call_operand.vmem [shape: f32[1,128], index: 21, kind: input, shape index: {}]   ;;  %s2921_s22 = inlined_call_operand.hbm [shape: bf16[128,128], index: 22, kind: input, shape index: {}]   ;;  %s2922_s23 = inlined_call_operand.vmem [shape: f32[1,128], index: 23, kind: input, shape index: {}]   ;;  %s2923_s24 = inlined_call_operand.hbm [shape: f32[32,128], index: 24, kind: output, shape index: {0}]   ;;  %s2924_s25 = inlined_call_operand.vmem [shape: f32[32,128], index: 25, kind: output, shape index: {1}]  }
   0x1   :  { %2929 = sst [smem:[#allocation32_spill]] %s2899_s0 }
   0x2   :  { %2930 = sst [smem:[#allocation33_spill]] %s2900_s1 }
   0x3   :  { %2931 = sst [smem:[#allocation34_spill]] %s2901_s2 }
   0x4   :  { %2932 = sst [smem:[#allocation35_spill]] %s2902_s3 }
   0x5   :  { %2933 = sst [smem:[#allocation36_spill]] %s2903_s4 }
   0x6   :  { %2934 = sst [smem:[#allocation37_spill]] %s2904_s5 }
   0x7   :  { %2935 = sst [smem:[#allocation38_spill]] %s2905_s6 }
   0x8   :  { %2936 = sst [smem:[#allocation39_spill]] %s2906_s7 }
   0x9   :  { %2937 = sst [smem:[#allocation40_spill]] %s2907_s8 }
   0xa   :  { %2938 = sst [smem:[#allocation41_spill]] %s2908_s9 }
   0xb   :  { %31 = vsyncpa [#allocation3], 0 }
   0xc   :  { %32 = vsyncpa [#allocation6], 0 }
   0xd   :  { %33 = vsyncpa [#allocation9], 0 }
   0xe   :  { %34 = vsyncpa [#allocation12], 0 }
   0xf   :  { %35 = vsyncpa [#allocation15], 0 }
  0x10   :  { %36 = vsyncpa [#allocation18], 0 }
  0x11   :  { %37 = vsyncpa [#allocation21], 0 }
  0x12   :  { %38 = vsyncpa [#allocation4], 0  ;;  %s2496_s29 = smov [#allocation5]  }
  0x13   :  { %s64_s2 = sshll.u32 %s2496_s29, 4  ;;  %s65_s2 = int_to_ptr.vmem [resolvable:$true] %s64_s2 }
  0x14   :  { %s2208_s6 = scalar_lea.vmem %s65_s2, 1024  ;;  %p2213_p1 = scmp.lt.s32.totalorder %s65_s2, %s65_s2 }
  0x15   :  { %p2209_p0 = scmp.ne.s32.totalorder %s65_s2, %s2208_s6  ;;  %p2214_p2 = scmp.lt.s32.totalorder %s2208_s6, %s2208_s6 }
  0x17   :  { %p2215_p3 = por %p2214_p2, %p2213_p1 }
  0x19   :  { %p2216_p4 = pnand %p2215_p3, %p2209_p0 }
  0x1b   :  { %2219 = shalt.err (!%p2216_p4)
}
  0x1c   :  { %s2497_s30 = smov 64   ;;  %s2498_s7 = smov 4  }
  0x1d   :  { %s2939_s1 = sld [smem:[#allocation38_spill]]  ;;  %s2499_s8 = smov [#allocation8]  }
  0x1e   :  { %s86_s27 = sshll.u32 %s2499_s8, 4  ;;  %s2500_s4 = smov [#allocation11]   ;;  %s87_s27 = int_to_ptr.vmem [resolvable:$true] %s86_s27 }
  0x1f   :  { %s111_s28 = sshll.u32 %s2500_s4, 4  ;;  %s2228_s9 = scalar_lea.vmem %s87_s27, 1024  ;;  %s112_s28 = int_to_ptr.vmem [resolvable:$true] %s111_s28 }
  0x20   :  { %p2229_p5 = scmp.ne.s32.totalorder %s87_s27, %s2228_s9  ;;  %p2233_p6 = scmp.lt.s32.totalorder %s87_s27, %s87_s27 }
  0x21   :  { %p2234_p7 = scmp.lt.s32.totalorder %s2228_s9, %s2228_s9 }
  0x23   :  { %70 = dma.hbm_to_vmem [thread:$0]  %s2939_s1, 1024, %s65_s2, [#allocation6], %s2497_s30, %s2497_s30, %s2498_s7  }
  0x24   :  { %p2235_p8 = por %p2234_p7, %p2233_p6 }
  0x26   :  { %p2236_p9 = pnand %p2235_p8, %p2229_p5 }
  0x28   :  { %2239 = shalt.err (!%p2236_p9)
}
  0x29   :  { %s2940_s29 = sld [smem:[#allocation40_spill]]  ;;  %s2248_s2 = scalar_lea.vmem %s112_s28, 32 }
  0x2a   :  { %p2249_p10 = scmp.ne.s32.totalorder %s112_s28, %s2248_s2  ;;  %p2253_p11 = scmp.lt.s32.totalorder %s112_s28, %s112_s28 }
  0x2b   :  { %p2254_p12 = scmp.lt.s32.totalorder %s2248_s2, %s2248_s2 }
  0x2d   :  { %p2255_p13 = por %p2254_p12, %p2253_p11 }
  0x2f   :  { %92 = dma.hbm_to_vmem [thread:$0]  %s2940_s29, 1024, %s87_s27, [#allocation9], %s2497_s30, %s2497_s30, %s2498_s7  }
  0x30   :  { %p2256_p0 = pnand %p2255_p13, %p2249_p10 }
  0x32   :  { %2259 = shalt.err (!%p2256_p0)
}
  0x33   :  { %114 = dma.hbm_to_vmem [thread:$0]  %s2910_s11, 32, %s112_s28, [#allocation12]  }
  0x34   :  { %s2501_s26 = smov [#allocation14]   ;;  %s2502_s8 = smov [#allocation17]  }
  0x35   :  { %s131_s1 = sshll.u32 %s2501_s26, 4  ;;  %s152_s4 = sshll.u32 %s2502_s8, 4  ;;  %s132_s1 = int_to_ptr.vmem [resolvable:$true] %s131_s1  ;;  %s153_s4 = int_to_ptr.vmem [resolvable:$true] %s152_s4 }
  0x36   :  { %s2268_s9 = scalar_lea.vmem %s132_s1, 16  ;;  %s2272_s27 = scalar_lea.vmem %s132_s1, 32 }
  0x37   :  { %p2269_p1 = scmp.ne.s32.totalorder %s132_s1, %s2268_s9  ;;  %p2273_p2 = scmp.lt.s32.totalorder %s132_s1, %s132_s1 }
  0x38   :  { %p2274_p3 = scmp.lt.s32.totalorder %s2272_s27, %s2268_s9 }
  0x3a   :  { %p2275_p4 = por %p2274_p3, %p2273_p2 }
  0x3c   :  { %p2276_p5 = pnand %p2275_p4, %p2269_p1 }
  0x3e   :  { %2279 = shalt.err (!%p2276_p5)
}
  0x3f   :  { %134 = dma.hbm_to_vmem [thread:$0]  %s2912_s13, 16, %s132_s1, [#allocation15]  }
  0x40   :  { %s2288_s29 = scalar_lea.vmem %s153_s4, 1024  ;;  %p2293_p7 = scmp.lt.s32.totalorder %s153_s4, %s153_s4 }
  0x41   :  { %p2289_p6 = scmp.ne.s32.totalorder %s153_s4, %s2288_s29  ;;  %p2294_p8 = scmp.lt.s32.totalorder %s2288_s29, %s2288_s29 }
  0x43   :  { %p2295_p9 = por %p2294_p8, %p2293_p7 }
  0x45   :  { %p2296_p10 = pnand %p2295_p9, %p2289_p6 }
  0x47   :  { %2299 = shalt.err (!%p2296_p10)
}
  0x48   :  { %158 = dma.hbm_to_vmem [thread:$0]  %s2915_s16, 1024, %s153_s4, [#allocation18], %s2497_s30, %s2497_s30, %s2498_s7  }
  0x49   :  { %s2503_s2 = smov [#allocation20]   ;;  %s2504_s3 = smov [#allocation2]  }
  0x4a   :  { %s180_s6 = sshll.u32 %s2503_s2, 4  ;;  %s55_s13 = sshll.u32 %s2504_s3, 4  ;;  %s181_s6 = int_to_ptr.vmem [resolvable:$true] %s180_s6  ;;  %s56_s13 = int_to_ptr.vmem [resolvable:$true] %s55_s13 }
  0x4b   :  { %s2308_s26 = scalar_lea.vmem %s181_s6, 1024  ;;  %p2313_p12 = scmp.lt.s32.totalorder %s181_s6, %s181_s6 }
  0x4c   :  { %p2309_p11 = scmp.ne.s32.totalorder %s181_s6, %s2308_s26  ;;  %p2314_p13 = scmp.lt.s32.totalorder %s2308_s26, %s2308_s26 }
  0x4e   :  { %p2315_p0 = por %p2314_p13, %p2313_p12 }
  0x50   :  { %p2316_p1 = pnand %p2315_p0, %p2309_p11 }
  0x52   :  { %2319 = shalt.err (!%p2316_p1)
}
  0x53   :  { %186 = dma.hbm_to_vmem [thread:$0]  %s2919_s20, 1024, %s181_s6, [#allocation21], %s2497_s30, %s2497_s30, %s2498_s7  }
  0x54   :  { %s2328_s16 = scalar_lea.vmem %s56_s13, 16  ;;  %s2332_s4 = scalar_lea.vmem %s56_s13, 32 }
  0x55   :  { %p2329_p2 = scmp.ne.s32.totalorder %s56_s13, %s2328_s16  ;;  %p2333_p3 = scmp.lt.s32.totalorder %s56_s13, %s56_s13 }
  0x56   :  { %p2334_p4 = scmp.lt.s32.totalorder %s2332_s4, %s2328_s16 }
  0x58   :  { %p2335_p5 = por %p2334_p4, %p2333_p3 }
  0x5a   :  { %p2336_p6 = pnand %p2335_p5, %p2329_p2 }
  0x5c   :  { %2339 = shalt.err (!%p2336_p6)
}
  0x5d   :  { %s2941_s5 = sld [smem:[#allocation37_spill]]  ;;  %s2505_s0 = smov [#allocation7]  }
  0x5e   :  { %s77_s29 = sshll.u32 %s2505_s0, 4  ;;  %s2506_s11 = smov [#allocation10]   ;;  %s78_s29 = int_to_ptr.vmem [resolvable:$true] %s77_s29 }
  0x5f   :  { %s99_s28 = sshll.u32 %s2506_s11, 4  ;;  %s2348_s2 = scalar_lea.vmem %s78_s29, 16  ;;  %s100_s28 = int_to_ptr.vmem [resolvable:$true] %s99_s28 }
  0x60   :  { %p2349_p7 = scmp.ne.s32.totalorder %s78_s29, %s2348_s2  ;;  %s2352_s20 = scalar_lea.vmem %s78_s29, 32 }
  0x61   :  { %p2353_p8 = scmp.lt.s32.totalorder %s78_s29, %s78_s29  ;;  %p2354_p9 = scmp.lt.s32.totalorder %s2352_s20, %s2348_s2 }
  0x63   :  { %58 = dma.hbm_to_vmem [thread:$0]  %s2941_s5, 16, %s56_s13, [#allocation3]  }
  0x64   :  { %p2355_p10 = por %p2354_p9, %p2353_p8 }
  0x66   :  { %p2356_p11 = pnand %p2355_p10, %p2349_p7 }
  0x68   :  { %2359 = shalt.err (!%p2356_p11)
}
  0x69   :  { %s2942_s26 = sld [smem:[#allocation39_spill]]  ;;  %s2368_s1 = scalar_lea.vmem %s100_s28, 16 }
  0x6a   :  { %p2369_p12 = scmp.ne.s32.totalorder %s100_s28, %s2368_s1  ;;  %s2372_s13 = scalar_lea.vmem %s100_s28, 32 }
  0x6b   :  { %p2373_p13 = scmp.lt.s32.totalorder %s100_s28, %s100_s28  ;;  %p2374_p0 = scmp.lt.s32.totalorder %s2372_s13, %s2368_s1 }
  0x6d   :  { %p2375_p1 = por %p2374_p0, %p2373_p13 }
  0x6f   :  { %80 = dma.hbm_to_vmem [thread:$0]  %s2942_s26, 16, %s78_s29, [#allocation6]  }
  0x70   :  { %p2376_p2 = pnand %p2375_p1, %p2369_p12 }
  0x72   :  { %2379 = shalt.err (!%p2376_p2)
}
  0x73   :  { %s2943_s4 = sld [smem:[#allocation41_spill]]  ;;  %s2507_s9 = smov [#allocation13]  }
  0x74   :  { %s121_s27 = sshll.u32 %s2507_s9, 4  ;;  %s2508_s5 = smov [#allocation16]   ;;  %s122_s27 = int_to_ptr.vmem [resolvable:$true] %s121_s27 }
  0x75   :  { %s143_s0 = sshll.u32 %s2508_s5, 4  ;;  %s2388_s11 = scalar_lea.vmem %s122_s27, 16  ;;  %s144_s0 = int_to_ptr.vmem [resolvable:$true] %s143_s0 }
  0x76   :  { %p2389_p3 = scmp.ne.s32.totalorder %s122_s27, %s2388_s11  ;;  %s2392_s29 = scalar_lea.vmem %s122_s27, 32 }
  0x77   :  { %p2393_p4 = scmp.lt.s32.totalorder %s122_s27, %s122_s27  ;;  %p2394_p5 = scmp.lt.s32.totalorder %s2392_s29, %s2388_s11 }
  0x79   :  { %102 = dma.hbm_to_vmem [thread:$0]  %s2943_s4, 16, %s100_s28, [#allocation9]  }
  0x7a   :  { %p2395_p6 = por %p2394_p5, %p2393_p4 }
  0x7c   :  { %p2396_p7 = pnand %p2395_p6, %p2389_p3 }
  0x7e   :  { %2399 = shalt.err (!%p2396_p7)
}
  0x7f   :  { %124 = dma.hbm_to_vmem [thread:$0]  %s2911_s12, 16, %s122_s27, [#allocation12]  }
  0x80   :  { %s2408_s6 = scalar_lea.vmem %s144_s0, 16  ;;  %s2412_s28 = scalar_lea.vmem %s144_s0, 32 }
  0x81   :  { %p2409_p8 = scmp.ne.s32.totalorder %s144_s0, %s2408_s6  ;;  %p2413_p9 = scmp.lt.s32.totalorder %s144_s0, %s144_s0 }
  0x82   :  { %p2414_p10 = scmp.lt.s32.totalorder %s2412_s28, %s2408_s6 }
  0x84   :  { %p2415_p11 = por %p2414_p10, %p2413_p9 }
  0x86   :  { %p2416_p12 = pnand %p2415_p11, %p2409_p8 }
  0x88   :  { %2419 = shalt.err (!%p2416_p12)
}
  0x89   :  { %146 = dma.hbm_to_vmem [thread:$0]  %s2914_s15, 16, %s144_s0, [#allocation15]  }
  0x8a   :  { %s2509_s1 = smov [#allocation19]   ;;  %s2510_s8 = smov [#allocation22]  }
  0x8b   :  { %s166_s13 = sshll.u32 %s2509_s1, 4  ;;  %s194_s16 = sshll.u32 %s2510_s8, 4  ;;  %s167_s13 = int_to_ptr.vmem [resolvable:$true] %s166_s13  ;;  %s195_s16 = int_to_ptr.vmem [resolvable:$true] %s194_s16 }
  0x8c   :  { %s2428_s4 = scalar_lea.vmem %s167_s13, 1024  ;;  %p2433_p0 = scmp.lt.s32.totalorder %s167_s13, %s167_s13 }
  0x8d   :  { %p2429_p13 = scmp.ne.s32.totalorder %s167_s13, %s2428_s4  ;;  %p2434_p1 = scmp.lt.s32.totalorder %s2428_s4, %s2428_s4 }
  0x8f   :  { %p2435_p2 = por %p2434_p1, %p2433_p0 }
  0x91   :  { %p2436_p3 = pnand %p2435_p2, %p2429_p13 }
  0x93   :  { %2439 = shalt.err (!%p2436_p3)
}
  0x94   :  { %172 = dma.hbm_to_vmem [thread:$0]  %s2917_s18, 1024, %s167_s13, [#allocation18], %s2497_s30, %s2497_s30, %s2498_s7  }
  0x95   :  { %s2448_s15 = scalar_lea.vmem %s195_s16, 1024  ;;  %p2453_p5 = scmp.lt.s32.totalorder %s195_s16, %s195_s16 }
  0x96   :  { %p2449_p4 = scmp.ne.s32.totalorder %s195_s16, %s2448_s15  ;;  %p2454_p6 = scmp.lt.s32.totalorder %s2448_s15, %s2448_s15 }
  0x98   :  { %p2455_p7 = por %p2454_p6, %p2453_p5 }
  0x9a   :  { %p2456_p8 = pnand %p2455_p7, %p2449_p4 }
  0x9c   :  { %2459 = shalt.err (!%p2456_p8)
}
  0x9d   :  { %200 = dma.hbm_to_vmem [thread:$0]  %s2921_s22, 1024, %s195_s16, [#allocation21], %s2497_s30, %s2497_s30, %s2498_s7  }
  0x9e   :  { %2480 = dma.done.wait [#allocation3], 16  }
  0x9f   :  { %2481 = vsyncadd [#allocation3], 4294967280 }
  0xa0   :  { %2482 = dma.done.wait [#allocation6], 1040  }
  0xa1   :  { %2483 = vsyncadd [#allocation6], 4294966256 }
  0xa2   :  { %2484 = dma.done.wait [#allocation9], 1040  }
  0xa3   :  { %2485 = vsyncadd [#allocation9], 4294966256 }
  0xa4   :  { %2486 = dma.done.wait [#allocation12], 48  }
  0xa5   :  { %2487 = vsyncadd [#allocation12], 4294967248 }
  0xa6   :  { %2488 = dma.done.wait [#allocation15], 32  }
  0xa7   :  { %2489 = vsyncadd [#allocation15], 4294967264 }
  0xa8   :  { %2490 = dma.done.wait [#allocation18], 2048  }
  0xa9   :  { %2491 = vsyncadd [#allocation18], 4294965248 }
  0xaa   :  { %2492 = dma.done.wait [#allocation21], 2048  }
  0xab   :  { %2493 = vsyncadd [#allocation21], 4294965248  ;;  %s2944_s11 = sld [smem:[#allocation34_spill]]  ;;  %v2102_v18 = vld [vmem:[#allocation5 + $0x38] sm:$0xff]   ;;  %v2103_v19 = vld [vmem:[#allocation5 + $0x30] sm:$0xff]  }
  0xac   :  { %s2945_s3 = sld [smem:[#allocation32_spill]]  ;;  %v2104_v20 = vld [vmem:[#allocation5 + $0x28] sm:$0xff]   ;;  %v2105_v21 = vld [vmem:[#allocation5 + $0x20] sm:$0xff]   ;;  %v2106_v22 = vld [vmem:[#allocation5 + $0x18] sm:$0xff]  }
  0xad   :  { %s2946_s13 = sld [smem:[#allocation36_spill]]  ;;  %v2107_v38 = vld [vmem:[#allocation5 + $0x10] sm:$0xff]   ;;  %v2108_v39 = vld [vmem:[#allocation5 + $0x8] sm:$0xff]   ;;  %v2109_v40 = vld [vmem:[#allocation5] sm:$0xff]  }
  0xae   :  { %s2947_s12 = sld [smem:[#allocation35_spill]]  ;;  %v2110_v41 = vld [vmem:[#allocation8 + $0x38] sm:$0xff]   ;;  %v2111_v42 = vld [vmem:[#allocation8 + $0x30] sm:$0xff]   ;;  %v2112_v43 = vld [vmem:[#allocation8 + $0x28] sm:$0xff]  }
  0xaf   :  { %v2113_v44 = vld [vmem:[#allocation8 + $0x20] sm:$0xff]   ;;  %v2114_v45 = vld [vmem:[#allocation8 + $0x18] sm:$0xff]   ;;  %v2115_v61 = vld [vmem:[#allocation8 + $0x10] sm:$0xff]   ;;  %s2948_s27 = sld [smem:[#allocation33_spill]] }
  0xb0   :  { %v1707_v48 = vld [vmem:[#allocation2] ss:$0 sm:$0xff]  ;;  %v2116_v62 = vld [vmem:[#allocation8 + $0x8] sm:$0xff]   ;;  %v2117_v63 = vld [vmem:[#allocation8] sm:$0xff]  }
  0xb1   :  { %v2084_v0 = vld [vmem:[%s2944_s11 + $0x38] sm:$0xff]   ;;  %v2085_v1 = vld [vmem:[%s2944_s11 + $0x30] sm:$0xff]   ;;  %v2086_v2 = vld [vmem:[%s2944_s11 + $0x28] sm:$0xff]  }
  0xb2   :  { %1885 = vmatprep.subr.bf16.mxu0 %v2084_v0  ;;  %v2087_v3 = vld [vmem:[%s2944_s11 + $0x20] sm:$0xff]   ;;  %v2088_v7 = vld [vmem:[%s2944_s11 + $0x18] sm:$0xff]   ;;  %v2089_v8 = vld [vmem:[%s2944_s11 + $0x10] sm:$0xff]  }
  0xb3   :  { %1886 = vmatpush3.bf16.msra.mxu0 %v2084_v0  ;;  %v2092_v4 = vld [vmem:[%s2945_s3] sm:$0xff]   ;;  %v2094_v5 = vld [vmem:[%s2946_s13 + $0x38] sm:$0xff]   ;;  %v2095_v6 = vld [vmem:[%s2946_s13 + $0x30] sm:$0xff]  }
  0xb4   :  { %1887 = vmatprep.subr.bf16.mxu0 %v2085_v1  ;;  %1901 = vmatprep.mubr.bf16.mxu0 %v2092_v4  ;;  %v2096_v9 = vld [vmem:[%s2946_s13 + $0x28] sm:$0xff]   ;;  %v2097_v10 = vld [vmem:[%s2946_s13 + $0x20] sm:$0xff]   ;;  %v2098_v12 = vld [vmem:[%s2946_s13 + $0x18] sm:$0xff]  }
  0xb5   :  { %1905 = vmatprep.subr.bf16.mxu1 %v2094_v5  ;;  %v2090_v11 = vld [vmem:[%s2944_s11 + $0x8] sm:$0xff]   ;;  %v2091_v13 = vld [vmem:[%s2944_s11] sm:$0xff]   ;;  %v2099_v15 = vld [vmem:[%s2946_s13 + $0x10] sm:$0xff]  }
  0xb6   :  { %1906 = vmatpush3.bf16.msra.mxu1 %v2094_v5  ;;  %v2093_v14 = vld [vmem:[%s2945_s3 + $0x8] sm:$0xff]   ;;  %v2101_v17 = vld [vmem:[%s2946_s13] sm:$0xff]   ;;  %v2118_v0 = vld [vmem:[%s2909_s10 + $0x70] ss:$8 sps:$4 sm:$0xff]  }
  0xb7   :  { %1888 = vmatpush3.bf16.msra.mxu0 %v2085_v1  ;;  %1907 = vmatprep.subr.bf16.mxu1 %v2095_v6  ;;  %v2100_v16 = vld [vmem:[%s2946_s13 + $0x8] sm:$0xff]   ;;  %v1696_v25 = vld [vmem:[%s2947_s12] ss:$0 sm:$0xff]  ;;  %v2120_v1 = vld [vmem:[%s2909_s10 + $0x74] ss:$8 sps:$4 sm:$0xff]  }
  0xb8   :  { %1889 = vmatprep.subr.bf16.mxu0 %v2086_v2  ;;  %v2126_v4 = vld [vmem:[%s2909_s10 + $0x54] ss:$8 sps:$4 sm:$0xff]   ;;  %v2124_v5 = vld [vmem:[%s2909_s10 + $0x50] ss:$8 sps:$4 sm:$0xff]  }
  0xba   :  { %1908 = vmatpush3.bf16.msra.mxu1 %v2095_v6  ;;  %v2129_v6 = vld [vmem:[%s2909_s10 + $0x44] ss:$8 sps:$4 sm:$0xff]  }
  0xbb   :  { %1890 = vmatpush3.bf16.msra.mxu0 %v2086_v2  ;;  %1909 = vmatprep.subr.bf16.mxu1 %v2096_v9  ;;  %v2123_v2 = vld [vmem:[%s2909_s10 + $0x64] ss:$8 sps:$4 sm:$0xff]  }
  0xbc   :  { %1891 = vmatprep.subr.bf16.mxu0 %v2087_v3 }
  0xbe   :  { %1910 = vmatpush3.bf16.msra.mxu1 %v2096_v9  ;;  %v2130_v9 = vld [vmem:[%s2909_s10 + $0x30] ss:$8 sps:$4 sm:$0xff]  }
  0xbf   :  { %1892 = vmatpush3.bf16.msra.mxu0 %v2087_v3  ;;  %1911 = vmatprep.subr.bf16.mxu1 %v2097_v10  ;;  %v2121_v3 = vld [vmem:[%s2909_s10 + $0x60] ss:$8 sps:$4 sm:$0xff]  }
  0xc0   :  { %1893 = vmatprep.subr.bf16.mxu0 %v2088_v7 }
  0xc2   :  { %1912 = vmatpush3.bf16.msra.mxu1 %v2097_v10 }
  0xc3   :  { %1894 = vmatpush3.bf16.msra.mxu0 %v2088_v7  ;;  %1913 = vmatprep.subr.bf16.mxu1 %v2098_v12  ;;  %v2127_v7 = vld [vmem:[%s2909_s10 + $0x40] ss:$8 sps:$4 sm:$0xff]  }
  0xc4   :  { %1895 = vmatprep.subr.bf16.mxu0 %v2089_v8 }
  0xc6   :  { %1914 = vmatpush3.bf16.msra.mxu1 %v2098_v12  ;;  %v1716_v12 = vld [vmem:[#allocation7] ss:$0 sm:$0xff] }
  0xc7   :  { %1896 = vmatpush3.bf16.msra.mxu0 %v2089_v8  ;;  %1915 = vmatprep.subr.bf16.mxu1 %v2099_v15  ;;  %v2132_v8 = vld [vmem:[%s2909_s10 + $0x34] ss:$8 sps:$4 sm:$0xff]  }
  0xc8   :  { %1897 = vmatprep.subr.bf16.mxu0 %v2090_v11 }
  0xca   :  { %1916 = vmatpush3.bf16.msra.mxu1 %v2099_v15 }
  0xcb   :  { %1898 = vmatpush3.bf16.msra.mxu0 %v2090_v11  ;;  %1917 = vmatprep.subr.bf16.mxu1 %v2100_v16 }
  0xcc   :  { %1899 = vmatprep.subr.bf16.mxu0 %v2091_v13 }
  0xce   :  { %1918 = vmatpush3.bf16.msra.mxu1 %v2100_v16 }
  0xcf   :  { %1900 = vmatpush3.bf16.msra.mxu0 %v2091_v13  ;;  %1919 = vmatprep.subr.bf16.mxu1 %v2101_v17 }
  0xd0   :  { %1925 = vmatprep.subr.bf16.mxu0 %v2102_v18 }
  0xd2   :  { %1902 = vmatmul.mubr.bf16.vlgmr.msra.gmra.mxu0 %v2093_v14  ;;  %1920 = vmatpush3.bf16.msra.mxu1 %v2101_v17 }
  0xd3   :  { %1926 = vmatpush3.bf16.msra.mxu0 %v2102_v18  ;;  %1945 = vmatprep.subr.bf16.mxu1 %v2110_v41 }
  0xd4   :  { %1927 = vmatprep.subr.bf16.mxu0 %v2103_v19 }
  0xd7   :  { %1928 = vmatpush3.bf16.msra.mxu0 %v2103_v19 }
  0xd8   :  { %1929 = vmatprep.subr.bf16.mxu0 %v2104_v20 }
  0xdb   :  { %1930 = vmatpush3.bf16.msra.mxu0 %v2104_v20 }
  0xdc   :  { %1931 = vmatprep.subr.bf16.mxu0 %v2105_v21 }
  0xdf   :  { %1932 = vmatpush3.bf16.msra.mxu0 %v2105_v21 }
  0xe0   :  { %1933 = vmatprep.subr.bf16.mxu0 %v2106_v22 }
  0xe3   :  { %1934 = vmatpush3.bf16.msra.mxu0 %v2106_v22 }
  0xe4   :  { %1935 = vmatprep.subr.bf16.mxu0 %v2107_v38 }
  0xe7   :  { %1936 = vmatpush3.bf16.msra.mxu0 %v2107_v38 }
  0xe8   :  { %1937 = vmatprep.subr.bf16.mxu0 %v2108_v39 }
  0xeb   :  { %1938 = vmatpush3.bf16.msra.mxu0 %v2108_v39 }
  0xec   :  { %1939 = vmatprep.subr.bf16.mxu0 %v2109_v40 }
  0xef   :  { %1940 = vmatpush3.bf16.msra.mxu0 %v2109_v40 }
  0xf0   :  { %871 = vmatprep.subr.bf16.mxu0 %v2120_v1 }
 0x192   :  { %v1903_v23 = vpop.f32.mrf.mxu0 }
 0x193   :  { %v373_v29 = vadd.f32 %v1903_v23, %v1696_v25 }
 0x194   :  { %v364_v24 = vpop.f32.mrf.mxu0 }
 0x195   :  { %v365_v27 = vadd.f32 %v1696_v25, %v364_v24  ;;  %v381_v35 = vmax.f32 %v373_v29, 0.0  ;;  %v2141_v29 = vld [vmem:[%s2909_s10 + $0x4] ss:$8 sps:$4 sm:$0xff]  }
 0x196   :  { %v1904_v26 = vpop.f32.mrf.mxu0 }
 0x197   :  { %v376_v28 = vadd.f32 %v1904_v26, %v1696_v25  ;;  %v379_v33 = vmax.f32 %v365_v27, 0.0  ;;  %v2133_v26 = vld [vmem:[%s2909_s10 + $0x20] ss:$8 sps:$4 sm:$0xff]   ;;  %v2138_v27 = vld [vmem:[%s2909_s10 + $0x14] ss:$8 sps:$4 sm:$0xff]  }
 0x198   :  { %v367_v30 = vpop.f32.mrf.mxu0 }
 0x199   :  { %v368_v31 = vadd.f32 %v1696_v25, %v367_v30  ;;  %v382_v32 = vmax.f32 %v376_v28, 0.0  ;;  %v2135_v25 = vld [vmem:[%s2909_s10 + $0x24] ss:$8 sps:$4 sm:$0xff]   ;;  %v2136_v28 = vld [vmem:[%s2909_s10 + $0x10] ss:$8 sps:$4 sm:$0xff]  }
 0x19a   :  { %v2139_v30 = vld [vmem:[%s2909_s10] ss:$8 sps:$4 sm:$0xff]  }
 0x19b   :  { %v380_v34 = vmax.f32 %v368_v31, 0.0  ;;  %v384_v37 = vpack.c.bf16 %v382_v32, %v381_v35  ;;  %v2511_v31 = vmov 0  }
 0x19d   :  { %v383_v36 = vpack.c.bf16 %v380_v34, %v379_v33  ;;  %v1725_v34 = vld [vmem:[#allocation10] ss:$0 sm:$0xff] }
 0x19f   :  { %1921 = vmatprep.mubr.bf16.mxu1 %v383_v36 }
 0x1a0   :  { %1922 = vmatmul.mubr.bf16.vlgmr.msra.gmra.mxu1 %v384_v37 }
 0x1a1   :  { %1946 = vmatpush3.bf16.msra.mxu1 %v2110_v41 }
 0x1a2   :  { %1947 = vmatprep.subr.bf16.mxu1 %v2111_v42 }
 0x1a5   :  { %1948 = vmatpush3.bf16.msra.mxu1 %v2111_v42 }
 0x1a6   :  { %1949 = vmatprep.subr.bf16.mxu1 %v2112_v43 }
 0x1a9   :  { %1950 = vmatpush3.bf16.msra.mxu1 %v2112_v43 }
 0x1aa   :  { %1951 = vmatprep.subr.bf16.mxu1 %v2113_v44 }
 0x1ad   :  { %1952 = vmatpush3.bf16.msra.mxu1 %v2113_v44 }
 0x1ae   :  { %1953 = vmatprep.subr.bf16.mxu1 %v2114_v45 }
 0x1b1   :  { %1954 = vmatpush3.bf16.msra.mxu1 %v2114_v45 }
 0x1b2   :  { %1955 = vmatprep.subr.bf16.mxu1 %v2115_v61 }
 0x1b5   :  { %1956 = vmatpush3.bf16.msra.mxu1 %v2115_v61 }
 0x1b6   :  { %1957 = vmatprep.subr.bf16.mxu1 %v2116_v62 }
 0x1b9   :  { %1958 = vmatpush3.bf16.msra.mxu1 %v2116_v62 }
 0x1ba   :  { %1959 = vmatprep.subr.bf16.mxu1 %v2117_v63 }
 0x1bd   :  { %1960 = vmatpush3.bf16.msra.mxu1 %v2117_v63  ;;  %v779_v63 = vld [vmem:[#allocation11] sm:$0x3] }
 0x260   :  { %v1923_v46 = vpop.f32.mrf.mxu1 }
 0x261   :  { %v499_v52 = vadd.f32 %v1923_v46, %v1707_v48 }
 0x262   :  { %v490_v47 = vpop.f32.mrf.mxu1 }
 0x263   :  { %v491_v50 = vadd.f32 %v1707_v48, %v490_v47  ;;  %v507_v58 = vmax.f32 %v499_v52, 0.0  ;;  %v2142_v47 = vld [vmem:[%s2913_s14 + $0x38] sm:$0xff]   ;;  %v2147_v52 = vld [vmem:[%s2913_s14 + $0x10] sm:$0xff]  }
 0x264   :  { %v1924_v49 = vpop.f32.mrf.mxu1  ;;  %1965 = vmatprep.subr.bf16.mxu1 %v2142_v47 }
 0x265   :  { %v502_v51 = vadd.f32 %v1924_v49, %v1707_v48  ;;  %v505_v56 = vmax.f32 %v491_v50, 0.0  ;;  %v2144_v49 = vld [vmem:[%s2913_s14 + $0x28] sm:$0xff]   ;;  %v2145_v50 = vld [vmem:[%s2913_s14 + $0x20] sm:$0xff]  }
 0x266   :  { %v493_v53 = vpop.f32.mrf.mxu1 }
 0x267   :  { %v494_v54 = vadd.f32 %v1707_v48, %v493_v53  ;;  %v508_v55 = vmax.f32 %v502_v51, 0.0  ;;  %v2143_v48 = vld [vmem:[%s2913_s14 + $0x30] sm:$0xff]   ;;  %v2146_v51 = vld [vmem:[%s2913_s14 + $0x18] sm:$0xff]   ;;  %v2148_v53 = vld [vmem:[%s2913_s14 + $0x8] sm:$0xff]  }
 0x269   :  { %v506_v57 = vmax.f32 %v494_v54, 0.0  ;;  %v510_v60 = vpack.c.bf16 %v508_v55, %v507_v58  ;;  %v2149_v54 = vld [vmem:[%s2913_s14] sm:$0xff]   ;;  %v2153_v58 = vld [vmem:[#allocation17 + $0x20] sm:$0xff]  }
 0x26a   :  { %v2150_v55 = vld [vmem:[#allocation17 + $0x38] sm:$0xff]  }
 0x26b   :  { %v509_v59 = vpack.c.bf16 %v506_v57, %v505_v56  ;;  %v2151_v56 = vld [vmem:[#allocation17 + $0x30] sm:$0xff]   ;;  %v2152_v57 = vld [vmem:[#allocation17 + $0x28] sm:$0xff]  }
 0x26d   :  { %1941 = vmatprep.mubr.bf16.mxu0 %v509_v59  ;;  %v2154_v59 = vld [vmem:[#allocation17 + $0x18] sm:$0xff]  }
 0x26e   :  { %1942 = vmatmul.mubr.bf16.vlgmr.msra.gmra.mxu0 %v510_v60  ;;  %v781_v60 = vlaneseq }
 0x26f   :  { %872 = vmatpush1.bf16.msra.mxu0 %v2118_v0  ;;  %903 = vmatprep.mubr.bf16.mxu0 %v2511_v31 }
 0x270   :  { %873 = vmatprep.subr.bf16.mxu0 %v2123_v2  ;;  %v782_v61 = vshrl.u32 %v781_v60, 7 }
 0x272   :  { %v2831_v62 = vsub.s32 0, %v782_v61  ;;  %v787_v1 = vsub.s32 1, %v782_v61 }
 0x273   :  { %874 = vmatpush1.bf16.msra.mxu0 %v2121_v3 }
 0x274   :  { %875 = vmatprep.subr.bf16.mxu0 %v2126_v4  ;;  %v784_v2 = vrot.slane %v779_v63, %v2831_v62 }
 0x277   :  { %876 = vmatpush1.bf16.msra.mxu0 %v2124_v5  ;;  %v788_v5 = vrot.slane %v779_v63, %v787_v1 }
 0x278   :  { %877 = vmatprep.subr.bf16.mxu0 %v2129_v6 }
 0x27b   :  { %878 = vmatpush1.bf16.msra.mxu0 %v2127_v7 }
 0x27c   :  { %879 = vmatprep.subr.bf16.mxu0 %v2132_v8 }
 0x27f   :  { %880 = vmatpush1.bf16.msra.mxu0 %v2130_v9 }
 0x280   :  { %881 = vmatprep.subr.bf16.mxu0 %v2135_v25 }
 0x283   :  { %882 = vmatpush1.bf16.msra.mxu0 %v2133_v26 }
 0x284   :  { %883 = vmatprep.subr.bf16.mxu0 %v2138_v27 }
 0x287   :  { %884 = vmatpush1.bf16.msra.mxu0 %v2136_v28 }
 0x288   :  { %885 = vmatprep.subr.bf16.mxu0 %v2141_v29 }
 0x28b   :  { %886 = vmatpush1.bf16.msra.mxu0 %v2139_v30 }
 0x28c   :  { %1985 = vmatprep.subr.bf16.mxu0 %v2150_v55 }
 0x32e   :  { %v1943_v10 = vpop.f32.mrf.mxu0 }
 0x32f   :  { %v625_v16 = vadd.f32 %v1943_v10, %v1716_v12 }
 0x330   :  { %v616_v11 = vpop.f32.mrf.mxu0 }
 0x331   :  { %v617_v14 = vadd.f32 %v1716_v12, %v616_v11  ;;  %v633_v22 = vmax.f32 %v625_v16, 0.0 }
 0x332   :  { %v1944_v13 = vpop.f32.mrf.mxu0 }
 0x333   :  { %v628_v15 = vadd.f32 %v1944_v13, %v1716_v12  ;;  %v631_v20 = vmax.f32 %v617_v14, 0.0 }
 0x334   :  { %v619_v17 = vpop.f32.mrf.mxu0 }
 0x335   :  { %v620_v18 = vadd.f32 %v1716_v12, %v619_v17  ;;  %v634_v19 = vmax.f32 %v628_v15, 0.0 }
 0x337   :  { %v632_v21 = vmax.f32 %v620_v18, 0.0  ;;  %v636_v24 = vpack.c.bf16 %v634_v19, %v633_v22 }
 0x339   :  { %v635_v23 = vpack.c.bf16 %v632_v21, %v631_v20 }
 0x33b   :  { %1961 = vmatprep.mubr.bf16.mxu1 %v635_v23 }
 0x33c   :  { %1962 = vmatmul.mubr.bf16.vlgmr.msra.gmra.mxu1 %v636_v24 }
 0x33d   :  { %1966 = vmatpush3.bf16.msra.mxu1 %v2142_v47 }
 0x33e   :  { %1967 = vmatprep.subr.bf16.mxu1 %v2143_v48 }
 0x341   :  { %1968 = vmatpush3.bf16.msra.mxu1 %v2143_v48 }
 0x342   :  { %1969 = vmatprep.subr.bf16.mxu1 %v2144_v49 }
 0x345   :  { %1970 = vmatpush3.bf16.msra.mxu1 %v2144_v49 }
 0x346   :  { %1971 = vmatprep.subr.bf16.mxu1 %v2145_v50 }
 0x349   :  { %1972 = vmatpush3.bf16.msra.mxu1 %v2145_v50 }
 0x34a   :  { %1973 = vmatprep.subr.bf16.mxu1 %v2146_v51 }
 0x34d   :  { %1974 = vmatpush3.bf16.msra.mxu1 %v2146_v51 }
 0x34e   :  { %1975 = vmatprep.subr.bf16.mxu1 %v2147_v52 }
 0x351   :  { %1976 = vmatpush3.bf16.msra.mxu1 %v2147_v52 }
 0x352   :  { %1977 = vmatprep.subr.bf16.mxu1 %v2148_v53 }
 0x355   :  { %1978 = vmatpush3.bf16.msra.mxu1 %v2148_v53 }
 0x356   :  { %1979 = vmatprep.subr.bf16.mxu1 %v2149_v54 }
 0x359   :  { %1980 = vmatpush3.bf16.msra.mxu1 %v2149_v54 }
 0x3fc   :  { %v1963_v32 = vpop.f32.mrf.mxu1 }
 0x3fd   :  { %v751_v43 = vadd.f32 %v1963_v32, %v1725_v34 }
 0x3fe   :  { %v742_v33 = vpop.f32.mrf.mxu1 }
 0x3ff   :  { %v743_v36 = vadd.f32 %v1725_v34, %v742_v33  ;;  %v759_v45 = vmax.f32 %v751_v43, 0.0 }
 0x400   :  { %v1964_v35 = vpop.f32.mrf.mxu1 }
 0x401   :  { %v757_v39 = vmax.f32 %v743_v36, 0.0  ;;  %v754_v41 = vadd.f32 %v1964_v35, %v1725_v34 }
 0x402   :  { %v745_v37 = vpop.f32.mrf.mxu1 }
 0x403   :  { %v746_v38 = vadd.f32 %v1725_v34, %v745_v37  ;;  %v760_v44 = vmax.f32 %v754_v41, 0.0 }
 0x405   :  { %v758_v40 = vmax.f32 %v746_v38, 0.0  ;;  %v762_v46 = vpack.c.bf16 %v760_v44, %v759_v45 }
 0x407   :  { %v761_v42 = vpack.c.bf16 %v758_v40, %v757_v39 }
 0x409   :  { %904 = vmatmul.mubr.bf16.vlgmr.msra.gmra.mxu0 %v761_v42 }
 0x40a   :  { %913 = vmatprep.mubr.bf16.mxu0 %v2511_v31  ;;  %1986 = vmatpush3.bf16.msra.mxu0 %v2150_v55 }
 0x40b   :  { %1987 = vmatprep.subr.bf16.mxu0 %v2151_v56 }
 0x40e   :  { %1988 = vmatpush3.bf16.msra.mxu0 %v2151_v56 }
 0x40f   :  { %1989 = vmatprep.subr.bf16.mxu0 %v2152_v57 }
 0x411   :  { %914 = vmatmul.mubr.bf16.gmra.mxu0 %v762_v46 }
 0x412   :  { %1990 = vmatpush3.bf16.msra.mxu0 %v2152_v57 }
 0x413   :  { %1991 = vmatprep.subr.bf16.mxu0 %v2153_v58 }
 0x416   :  { %1992 = vmatpush3.bf16.msra.mxu0 %v2153_v58 }
 0x417   :  { %1993 = vmatprep.subr.bf16.mxu0 %v2154_v59 }
 0x41a   :  { %1994 = vmatpush3.bf16.msra.mxu0 %v2154_v59 }
 0x4c9   :  { %v905_v0 = vpop.f32.mrf.mxu0 }
 0x4ca   :  { %v2836_v7 = vadd.f32 %v905_v0, %v784_v2  ;;  %v972_v0 = vld [vmem:[#allocation13] sm:$0x1] }
 0x4cb   :  { %v907_v3 = vpop.f32.mrf.mxu0 }
 0x4cc   :  { %v908_v11 = vadd.f32 %v907_v3, %v788_v5  ;;  %v955_v13 = vmul.f32 %v2836_v7, %v2836_v7 }
 0x4cd   :  { %v909_v4 = vpop.f32.mrf.mxu0 }
 0x4ce   :  { %v2834_v6 = vadd.f32 %v909_v4, %v784_v2  ;;  %v999_v21 = vsub.f32 0.0, %v908_v11  ;;  %v976_v4 = vld [vmem:[#allocation14] sm:$0x1]  ;;  %v1019_v11 = vld [vmem:[%s2948_s27] sm:$0xff] }
 0x4cf   :  { %v911_v8 = vpop.f32.mrf.mxu0 }
 0x4d0   :  { %v956_v9 = vmul.f32 %v2834_v6, %v2834_v6  ;;  %v912_v14 = vadd.f32 %v911_v8, %v788_v5  ;;  %v945_v16 = vadd.f32 %v2834_v6, %v2836_v7  ;;  %v1003_v31 = vmul.f32 1.442695, %v999_v21 }
 0x4d1   :  { %v915_v10 = vpop.f32.mrf.mxu0 }
 0x4d2   :  { %v2840_v12 = vadd.f32 %v915_v10, %v784_v2  ;;  %v959_v19 = vadd.f32 %v956_v9, %v955_v13  ;;  %v1000_v24 = vsub.f32 0.0, %v912_v14  ;;  %2182 = vpow2.f32 %v1003_v31 }
 0x4d3   :  { %v917_v15 = vpop.f32.mrf.mxu0 }
 0x4d4   :  { %v957_v17 = vmul.f32 %v2840_v12, %v2840_v12  ;;  %v918_v18 = vadd.f32 %v917_v15, %v788_v5  ;;  %v946_v22 = vadd.f32 %v945_v16, %v2840_v12  ;;  %v1005_v35 = vmul.f32 1.442695, %v1000_v24  ;;  %v1020_v15 = vld [vmem:[%s2948_s27 + $0x8] sm:$0xff]  ;;  %v1021_v16 = vld [vmem:[%s2948_s27 + $0x10] sm:$0xff] }
 0x4d5   :  { %v919_v20 = vpop.f32.mrf.mxu0 }
 0x4d6   :  { %v2849_v23 = vadd.f32 %v919_v20, %v784_v2  ;;  %v960_v25 = vadd.f32 %v959_v19, %v957_v17  ;;  %v1001_v27 = vsub.f32 0.0, %v918_v18  ;;  %2184 = vpow2.f32 %v1005_v35  ;;  %v1022_v17 = vld [vmem:[%s2948_s27 + $0x18] sm:$0xff] }
 0x4d7   :  { %v921_v26 = vpop.f32.mrf.mxu0 }
 0x4d8   :  { %v947_v28 = vadd.f32 %v946_v22, %v2849_v23  ;;  %v958_v29 = vmul.f32 %v2849_v23, %v2849_v23  ;;  %v922_v30 = vadd.f32 %v921_v26, %v788_v5  ;;  %v1007_v36 = vmul.f32 1.442695, %v1001_v27 }
 0x4da   :  { %v948_v32 = vrot.slane %v947_v28, 4  ;;  %v961_v33 = vadd.f32 %v960_v25, %v958_v29  ;;  %v1002_v34 = vsub.f32 0.0, %v922_v30  ;;  %2186 = vpow2.f32 %v1007_v36  ;;  %v2158_v36 = vld [vmem:[#allocation19 + $0x38] sm:$0xff]  }
 0x4db   :  { %2005 = vmatprep.subr.bf16.mxu1 %v2158_v36 }
 0x4dc   :  { %v949_v37 = vadd.f32 %v948_v32, %v947_v28  ;;  %v962_v38 = vrot.slane %v961_v33, 4  ;;  %v1009_v39 = vmul.f32 1.442695, %v1002_v34 }
 0x4de   :  { %v950_v40 = vrot.slane %v949_v37, 2  ;;  %v963_v41 = vadd.f32 %v962_v38, %v961_v33  ;;  %2188 = vpow2.f32 %v1009_v39  ;;  %v2160_v38 = vld [vmem:[#allocation19 + $0x28] sm:$0xff]   ;;  %v2161_v39 = vld [vmem:[#allocation19 + $0x20] sm:$0xff]  }
 0x4df   :  { %v2183_v53 = vpop.eup %2182 }
 0x4e0   :  { %v951_v42 = vadd.f32 %v950_v40, %v949_v37  ;;  %v964_v43 = vrot.slane %v963_v41, 2  ;;  %v1011_v58 = vadd.f32 1.0, %v2183_v53  ;;  %v2159_v37 = vld [vmem:[#allocation19 + $0x30] sm:$0xff]   ;;  %v2162_v40 = vld [vmem:[#allocation19 + $0x18] sm:$0xff]  }
 0x4e2   :  { %v952_v44 = vrot.slane %v951_v42, 1  ;;  %v965_v45 = vadd.f32 %v964_v43, %v963_v41  ;;  %v1750_v43 = vld [vmem:[#allocation16] ss:$0 sm:$0xff] }
 0x4e3   :  { %v2185_v54 = vpop.eup %2184 }
 0x4e4   :  { %v953_v46 = vadd.f32 %v952_v44, %v951_v42  ;;  %v966_v47 = vrot.slane %v965_v45, 1  ;;  %v1012_v60 = vadd.f32 1.0, %v2185_v54 }
 0x4e6   :  { %v954_v48 = vmul.f32 0.03125, %v953_v46  ;;  %v967_v49 = vadd.f32 %v966_v47, %v965_v45 }
 0x4e7   :  { %v2187_v56 = vpop.eup %2186 }
 0x4e8   :  { %v968_v50 = vmul.f32 0.03125, %v967_v49  ;;  %v969_v51 = vmul.f32 %v954_v48, %v954_v48  ;;  %v1013_v61 = vadd.f32 1.0, %v2187_v56  ;;  %v2163_v56 = vld [vmem:[#allocation19 + $0x10] sm:$0xff]  }
 0x4ea   :  { %v970_v52 = vsub.f32 %v968_v50, %v969_v51 }
 0x4eb   :  { %v2189_v57 = vpop.eup %2188 }
 0x4ec   :  { %v971_v55 = vmax.f32 %v970_v52, 0.0  ;;  %v1014_v63 = vadd.f32 1.0, %v2189_v57  ;;  %v2164_v57 = vld [vmem:[#allocation19 + $0x8] sm:$0xff]  }
 0x4ee   :  { %v973_v59 = vadd.f32 1e-10, %v971_v55 }
 0x4f0   :  { %2190 = vrsqrt.f32 %v973_v59  ;;  %v2166_v59 = vld [vmem:[#allocation20 + $0x38] sm:$0xff]  }
 0x4f1   :  { %2192 = vrsqrt.f32 %v1011_v58  ;;  %v2165_v58 = vld [vmem:[#allocation19] sm:$0xff]  }
 0x4f2   :  { %2194 = vrsqrt.f32 %v1012_v60  ;;  %v2167_v60 = vld [vmem:[#allocation20 + $0x30] sm:$0xff]  }
 0x4f3   :  { %2196 = vrsqrt.f32 %v1013_v61  ;;  %v2168_v61 = vld [vmem:[#allocation20 + $0x28] sm:$0xff]  }
 0x4f4   :  { %2198 = vrsqrt.f32 %v1014_v63  ;;  %v2169_v63 = vld [vmem:[#allocation20 + $0x20] sm:$0xff]  }
 0x4fd   :  { %v2191_v1 = vpop.eup %2190 }
 0x4fe   :  { %v975_v2 = vmul.f32 %v2191_v1, %v972_v0  ;;  %v2193_v3 = vpop.eup %2192  ;;  %v2170_v0 = vld [vmem:[#allocation20 + $0x18] sm:$0xff]  }
 0x4ff   :  { %v2195_v5 = vpop.eup %2194  ;;  %v1023_v24 = vmul.f32 %v2193_v3, %v1019_v11  ;;  %v1759_v3 = vld [vmem:[%s2916_s17] ss:$0 sm:$0xff] }
 0x500   :  { %v977_v8 = vmul.f32 %v975_v2, %v954_v48  ;;  %v983_v9 = vrot.slane %v975_v2, %v2831_v62  ;;  %v2197_v10 = vpop.eup %2196  ;;  %v1024_v25 = vmul.f32 %v2195_v5, %v1020_v15 }
 0x501   :  { %v2199_v13 = vpop.eup %2198  ;;  %v1025_v26 = vmul.f32 %v2197_v10, %v1021_v16 }
 0x502   :  { %v978_v14 = vsub.f32 %v976_v4, %v977_v8  ;;  %v988_v18 = vmul.f32 %v983_v9, %v2849_v23  ;;  %v985_v20 = vmul.f32 %v983_v9, %v2836_v7  ;;  %v986_v21 = vmul.f32 %v983_v9, %v2834_v6  ;;  %v2155_v6 = vld [vmem:[#allocation17 + $0x10] sm:$0xff]   ;;  %v2156_v7 = vld [vmem:[#allocation17 + $0x8] sm:$0xff]  }
 0x503   :  { %v987_v22 = vmul.f32 %v983_v9, %v2840_v12  ;;  %v1026_v27 = vmul.f32 %v2199_v13, %v1022_v17  ;;  %1995 = vmatprep.subr.bf16.mxu0 %v2155_v6  ;;  %v2157_v12 = vld [vmem:[#allocation17] sm:$0xff]  }
 0x504   :  { %v993_v19 = vrot.slane %v978_v14, %v2831_v62  ;;  %1996 = vmatpush3.bf16.msra.mxu0 %v2155_v6 }
 0x505   :  { %1997 = vmatprep.subr.bf16.mxu0 %v2156_v7 }
 0x506   :  { %v998_v28 = vadd.f32 %v993_v19, %v988_v18  ;;  %v995_v29 = vadd.f32 %v993_v19, %v985_v20  ;;  %v996_v30 = vadd.f32 %v993_v19, %v986_v21  ;;  %v997_v31 = vadd.f32 %v993_v19, %v987_v22  ;;  %v2171_v19 = vld [vmem:[#allocation20 + $0x10] sm:$0xff]   ;;  %v2172_v20 = vld [vmem:[#allocation20 + $0x8] sm:$0xff]   ;;  %v2173_v21 = vld [vmem:[#allocation20] sm:$0xff]  }
 0x507   :  { %v2174_v22 = vld [vmem:[#allocation22 + $0x38] sm:$0xff]  }
 0x508   :  { %v1027_v32 = vadd.f32 %v1023_v24, %v995_v29  ;;  %v1028_v33 = vadd.f32 %v1024_v25, %v996_v30  ;;  %v1029_v34 = vadd.f32 %v1025_v26, %v997_v31  ;;  %v1030_v23 = vadd.f32 %v1026_v27, %v998_v28  ;;  %1998 = vmatpush3.bf16.msra.mxu0 %v2156_v7  ;;  %v2175_v24 = vld [vmem:[#allocation22 + $0x30] sm:$0xff]   ;;  %v2176_v25 = vld [vmem:[#allocation22 + $0x28] sm:$0xff]   ;;  %v2177_v26 = vld [vmem:[#allocation22 + $0x20] sm:$0xff]  }
 0x509   :  { %1999 = vmatprep.subr.bf16.mxu0 %v2157_v12  ;;  %v2178_v27 = vld [vmem:[#allocation22 + $0x18] sm:$0xff]   ;;  %v1768_v30 = vld [vmem:[%s2918_s19] ss:$0 sm:$0xff] }
 0x50a   :  { %v1031_v35 = vpack.c.bf16 %v1028_v33, %v1027_v32  ;;  %1665 = vst [vmem:[%s2924_s25] sm:$0xff] %v1027_v32  ;;  %1666 = vst [vmem:[%s2924_s25 + $0x8] sm:$0xff] %v1028_v33  ;;  %v1032_v62 = vpack.c.bf16 %v1030_v23, %v1029_v34 }
 0x50b   :  { %1667 = vst [vmem:[%s2924_s25 + $0x10] sm:$0xff] %v1029_v34  ;;  %1668 = vst [vmem:[%s2924_s25 + $0x18] sm:$0xff] %v1030_v23 }
 0x50c   :  { %1981 = vmatprep.mubr.bf16.mxu1 %v1031_v35  ;;  %2000 = vmatpush3.bf16.msra.mxu0 %v2157_v12 }
 0x50d   :  { %1982 = vmatmul.mubr.bf16.vlgmr.msra.gmra.mxu1 %v1032_v62  ;;  %2025 = vmatprep.subr.bf16.mxu0 %v2166_v59 }
 0x50e   :  { %2006 = vmatpush3.bf16.msra.mxu1 %v2158_v36 }
 0x50f   :  { %2007 = vmatprep.subr.bf16.mxu1 %v2159_v37 }
 0x512   :  { %2008 = vmatpush3.bf16.msra.mxu1 %v2159_v37 }
 0x513   :  { %2009 = vmatprep.subr.bf16.mxu1 %v2160_v38 }
 0x516   :  { %2010 = vmatpush3.bf16.msra.mxu1 %v2160_v38  ;;  %v2179_v38 = vld [vmem:[#allocation22 + $0x10] sm:$0xff]  }
 0x517   :  { %2011 = vmatprep.subr.bf16.mxu1 %v2161_v39 }
 0x51a   :  { %2012 = vmatpush3.bf16.msra.mxu1 %v2161_v39  ;;  %v2180_v39 = vld [vmem:[#allocation22 + $0x8] sm:$0xff]  }
 0x51b   :  { %2013 = vmatprep.subr.bf16.mxu1 %v2162_v40 }
 0x51e   :  { %2014 = vmatpush3.bf16.msra.mxu1 %v2162_v40  ;;  %v2181_v40 = vld [vmem:[#allocation22] sm:$0xff]  }
 0x51f   :  { %2015 = vmatprep.subr.bf16.mxu1 %v2163_v56 }
 0x522   :  { %2016 = vmatpush3.bf16.msra.mxu1 %v2163_v56  ;;  %v1786_v56 = vld [vmem:[%s2922_s23] ss:$0 sm:$0xff] }
 0x523   :  { %2017 = vmatprep.subr.bf16.mxu1 %v2164_v57 }
 0x526   :  { %2018 = vmatpush3.bf16.msra.mxu1 %v2164_v57 }
 0x527   :  { %2019 = vmatprep.subr.bf16.mxu1 %v2165_v58 }
 0x52a   :  { %2020 = vmatpush3.bf16.msra.mxu1 %v2165_v58 }
 0x52b   :  { %2045 = vmatprep.subr.bf16.mxu1 %v2174_v22 }
 0x5cd   :  { %v1983_v41 = vpop.f32.mrf.mxu1 }
 0x5ce   :  { %v1147_v47 = vadd.f32 %v1983_v41, %v1750_v43 }
 0x5cf   :  { %v1138_v42 = vpop.f32.mrf.mxu1 }
 0x5d0   :  { %v1139_v45 = vadd.f32 %v1750_v43, %v1138_v42  ;;  %v1155_v53 = vmax.f32 %v1147_v47, 0.0 }
 0x5d1   :  { %v1984_v44 = vpop.f32.mrf.mxu1 }
 0x5d2   :  { %v1150_v46 = vadd.f32 %v1984_v44, %v1750_v43  ;;  %v1153_v51 = vmax.f32 %v1139_v45, 0.0 }
 0x5d3   :  { %v1141_v48 = vpop.f32.mrf.mxu1 }
 0x5d4   :  { %v1142_v49 = vadd.f32 %v1750_v43, %v1141_v48  ;;  %v1156_v50 = vmax.f32 %v1150_v46, 0.0  ;;  %v1777_v43 = vld [vmem:[%s2920_s21] ss:$0 sm:$0xff]  ;;  %s2512_s21 = smov [#allocation23]  }
 0x5d5   :  { %s1674_s13 = sshll.u32 %s2512_s21, 4  ;;  %s1675_s13 = int_to_ptr.vmem [resolvable:$true] %s1674_s13 }
 0x5d6   :  { %v1154_v52 = vmax.f32 %v1142_v49, 0.0  ;;  %v1158_v55 = vpack.c.bf16 %v1156_v50, %v1155_v53  ;;  %s2460_s23 = scalar_lea.vmem %s1675_s13, 512  ;;  %p2465_p10 = scmp.lt.s32.totalorder %s1675_s13, %s1675_s13 }
 0x5d7   :  { %p2461_p9 = scmp.ne.s32.totalorder %s1675_s13, %s2460_s23  ;;  %p2466_p11 = scmp.lt.s32.totalorder %s2460_s23, %s2460_s23 }
 0x5d8   :  { %v1157_v54 = vpack.c.bf16 %v1154_v52, %v1153_v51 }
 0x5d9   :  { %p2467_p12 = por %p2466_p11, %p2465_p10 }
 0x5da   :  { %2001 = vmatprep.mubr.bf16.mxu0 %v1157_v54 }
 0x5db   :  { %2002 = vmatmul.mubr.bf16.vlgmr.msra.gmra.mxu0 %v1158_v55  ;;  %p2468_p13 = pnand %p2467_p12, %p2461_p9 }
 0x5dc   :  { %2026 = vmatpush3.bf16.msra.mxu0 %v2166_v59 }
 0x5dd   :  { %2027 = vmatprep.subr.bf16.mxu0 %v2167_v60 }
 0x5e0   :  { %2028 = vmatpush3.bf16.msra.mxu0 %v2167_v60 }
 0x5e1   :  { %2029 = vmatprep.subr.bf16.mxu0 %v2168_v61 }
 0x5e4   :  { %2030 = vmatpush3.bf16.msra.mxu0 %v2168_v61 }
 0x5e5   :  { %2031 = vmatprep.subr.bf16.mxu0 %v2169_v63 }
 0x5e8   :  { %2032 = vmatpush3.bf16.msra.mxu0 %v2169_v63 }
 0x5e9   :  { %2033 = vmatprep.subr.bf16.mxu0 %v2170_v0 }
 0x5ec   :  { %2034 = vmatpush3.bf16.msra.mxu0 %v2170_v0 }
 0x5ed   :  { %2035 = vmatprep.subr.bf16.mxu0 %v2171_v19 }
 0x5f0   :  { %2036 = vmatpush3.bf16.msra.mxu0 %v2171_v19 }
 0x5f1   :  { %2037 = vmatprep.subr.bf16.mxu0 %v2172_v20 }
 0x5f4   :  { %2038 = vmatpush3.bf16.msra.mxu0 %v2172_v20 }
 0x5f5   :  { %2039 = vmatprep.subr.bf16.mxu0 %v2173_v21 }
 0x5f8   :  { %2040 = vmatpush3.bf16.msra.mxu0 %v2173_v21 }
 0x69b   :  { %v2003_v1 = vpop.f32.mrf.mxu0 }
 0x69c   :  { %v1273_v9 = vadd.f32 %v2003_v1, %v1759_v3 }
 0x69d   :  { %v1264_v2 = vpop.f32.mrf.mxu0 }
 0x69e   :  { %v1265_v5 = vadd.f32 %v1759_v3, %v1264_v2  ;;  %v1281_v16 = vmax.f32 %v1273_v9, 0.0 }
 0x69f   :  { %v2004_v4 = vpop.f32.mrf.mxu0 }
 0x6a0   :  { %v1276_v8 = vadd.f32 %v2004_v4, %v1759_v3  ;;  %v1279_v14 = vmax.f32 %v1265_v5, 0.0 }
 0x6a1   :  { %v1267_v10 = vpop.f32.mrf.mxu0 }
 0x6a2   :  { %v1268_v11 = vadd.f32 %v1759_v3, %v1267_v10  ;;  %v1282_v13 = vmax.f32 %v1276_v8, 0.0 }
 0x6a4   :  { %v1280_v15 = vmax.f32 %v1268_v11, 0.0  ;;  %v1284_v18 = vpack.c.bf16 %v1282_v13, %v1281_v16 }
 0x6a6   :  { %v1283_v17 = vpack.c.bf16 %v1280_v15, %v1279_v14 }
 0x6a8   :  { %2021 = vmatprep.mubr.bf16.mxu1 %v1283_v17 }
 0x6a9   :  { %2022 = vmatmul.mubr.bf16.vlgmr.msra.gmra.mxu1 %v1284_v18 }
 0x6aa   :  { %2046 = vmatpush3.bf16.msra.mxu1 %v2174_v22 }
 0x6ab   :  { %2047 = vmatprep.subr.bf16.mxu1 %v2175_v24 }
 0x6ae   :  { %2048 = vmatpush3.bf16.msra.mxu1 %v2175_v24 }
 0x6af   :  { %2049 = vmatprep.subr.bf16.mxu1 %v2176_v25 }
 0x6b2   :  { %2050 = vmatpush3.bf16.msra.mxu1 %v2176_v25 }
 0x6b3   :  { %2051 = vmatprep.subr.bf16.mxu1 %v2177_v26 }
 0x6b6   :  { %2052 = vmatpush3.bf16.msra.mxu1 %v2177_v26 }
 0x6b7   :  { %2053 = vmatprep.subr.bf16.mxu1 %v2178_v27 }
 0x6ba   :  { %2054 = vmatpush3.bf16.msra.mxu1 %v2178_v27 }
 0x6bb   :  { %2055 = vmatprep.subr.bf16.mxu1 %v2179_v38 }
 0x6be   :  { %2056 = vmatpush3.bf16.msra.mxu1 %v2179_v38 }
 0x6bf   :  { %2057 = vmatprep.subr.bf16.mxu1 %v2180_v39 }
 0x6c2   :  { %2058 = vmatpush3.bf16.msra.mxu1 %v2180_v39 }
 0x6c3   :  { %2059 = vmatprep.subr.bf16.mxu1 %v2181_v40 }
 0x6c6   :  { %2060 = vmatpush3.bf16.msra.mxu1 %v2181_v40 }
 0x769   :  { %v2023_v28 = vpop.f32.mrf.mxu1 }
 0x76a   :  { %v1399_v34 = vadd.f32 %v2023_v28, %v1768_v30 }
 0x76b   :  { %v1390_v29 = vpop.f32.mrf.mxu1 }
 0x76c   :  { %v1391_v32 = vadd.f32 %v1768_v30, %v1390_v29  ;;  %v1407_v12 = vmax.f32 %v1399_v34, 0.0 }
 0x76d   :  { %v2024_v31 = vpop.f32.mrf.mxu1 }
 0x76e   :  { %v1402_v33 = vadd.f32 %v2024_v31, %v1768_v30  ;;  %v1405_v6 = vmax.f32 %v1391_v32, 0.0 }
 0x76f   :  { %v1393_v23 = vpop.f32.mrf.mxu1 }
 0x770   :  { %v1394_v35 = vadd.f32 %v1768_v30, %v1393_v23  ;;  %v1408_v62 = vmax.f32 %v1402_v33, 0.0 }
 0x772   :  { %v1406_v7 = vmax.f32 %v1394_v35, 0.0  ;;  %v1410_v37 = vpack.c.bf16 %v1408_v62, %v1407_v12 }
 0x774   :  { %v1409_v36 = vpack.c.bf16 %v1406_v7, %v1405_v6 }
 0x776   :  { %2041 = vmatprep.mubr.bf16.mxu0 %v1409_v36 }
 0x777   :  { %2042 = vmatmul.mubr.bf16.vlgmr.msra.gmra.mxu0 %v1410_v37 }
 0x837   :  { %v2043_v41 = vpop.f32.mrf.mxu0 }
 0x838   :  { %v1525_v47 = vadd.f32 %v2043_v41, %v1777_v43 }
 0x839   :  { %v1516_v42 = vpop.f32.mrf.mxu0 }
 0x83a   :  { %v1517_v45 = vadd.f32 %v1777_v43, %v1516_v42  ;;  %v1533_v53 = vmax.f32 %v1525_v47, 0.0 }
 0x83b   :  { %v2044_v44 = vpop.f32.mrf.mxu0 }
 0x83c   :  { %v1528_v46 = vadd.f32 %v2044_v44, %v1777_v43  ;;  %v1531_v51 = vmax.f32 %v1517_v45, 0.0 }
 0x83d   :  { %v1519_v48 = vpop.f32.mrf.mxu0 }
 0x83e   :  { %v1520_v49 = vadd.f32 %v1777_v43, %v1519_v48  ;;  %v1534_v50 = vmax.f32 %v1528_v46, 0.0 }
 0x840   :  { %v1532_v52 = vmax.f32 %v1520_v49, 0.0  ;;  %v1536_v55 = vpack.c.bf16 %v1534_v50, %v1533_v53 }
 0x842   :  { %v1535_v54 = vpack.c.bf16 %v1532_v52, %v1531_v51 }
 0x844   :  { %2061 = vmatprep.mubr.bf16.mxu1 %v1535_v54 }
 0x845   :  { %2062 = vmatmul.mubr.bf16.vlgmr.msra.gmra.mxu1 %v1536_v55 }
 0x905   :  { %v2063_v57 = vpop.f32.mrf.mxu1 }
 0x906   :  { %v1651_v58 = vadd.f32 %v2063_v57, %v1786_v56 }
 0x907   :  { %v1642_v59 = vpop.f32.mrf.mxu1 }
 0x908   :  { %v1659_v60 = vmax.f32 %v1651_v58, 0.0  ;;  %v1643_v61 = vadd.f32 %v1786_v56, %v1642_v59 }
 0x909   :  { %v2064_v63 = vpop.f32.mrf.mxu1 }
 0x90a   :  { %1663 = vst [vmem:[#allocation23 + $0x10] sm:$0xff] %v1659_v60  ;;  %v1657_v0 = vmax.f32 %v1643_v61, 0.0  ;;  %v1654_v1 = vadd.f32 %v2064_v63, %v1786_v56 }
 0x90b   :  { %v1645_v2 = vpop.f32.mrf.mxu1 }
 0x90c   :  { %1661 = vst [vmem:[#allocation23] sm:$0xff] %v1657_v0  ;;  %v1660_v3 = vmax.f32 %v1654_v1, 0.0  ;;  %v1646_v4 = vadd.f32 %v1786_v56, %v1645_v2 }
 0x90e   :  { %1664 = vst [vmem:[#allocation23 + $0x18] sm:$0xff] %v1660_v3  ;;  %v1658_v5 = vmax.f32 %v1646_v4, 0.0 }
 0x910   :  { %1662 = vst [vmem:[#allocation23 + $0x8] sm:$0xff] %v1658_v5 }
 0x911   :  { %2471 = shalt.err (!%p2468_p13)
}
 0x912   :  { %s2513_s12 = smov 128   ;;  %s2514_s9 = smov 8  }
 0x913   :  { %1680 = dma.vmem_to_hbm [thread:$0]  %s1675_s13, 512, %s2923_s24, [#allocation4], %s2513_s12, %s2513_s12, %s2514_s9  }
 0x914   :  { %2494 = dma.done.wait [#allocation4], 512  }
 0x915   :  { %2495 = vsyncadd [#allocation4], 4294966784 }
 0x916   :  { %1688 = vsyncpa [#allocation3], 1 }
 0x917   :  { %1689 = vsyncpa [#allocation6], 1 }
 0x918   :  { %1690 = vsyncpa [#allocation9], 1 }
 0x919   :  { %1691 = vsyncpa [#allocation12], 1 }
 0x91a   :  { %1692 = vsyncpa [#allocation15], 1 }
 0x91b   :  { %1693 = vsyncpa [#allocation18], 1 }
 0x91c   :  { %1694 = vsyncpa [#allocation21], 1 }
 0x91d   :  { %1695 = vsyncpa [#allocation4], 1 }

</bundles_post_ra>
